<compile_context>
chip_gen: v5e
topology: v5e:2x2
jax: 0.10.0
libtpu: 0.0.40
codegen_flags: <defaults>
</compile_context>

<pallas_src>
import functools

import jax
import jax.numpy as jnp
from jax.experimental import pallas as pl
from jax.experimental.pallas import tpu as pltpu


def _pick_vmem_limit():
    """~100 MiB on 128-MiB-VMEM chips (v5e/v6e), 48 MiB on v7x (64 MiB VMEM)."""
    try:
        cap = int(pltpu.get_tpu_info().vmem_capacity_bytes)
    except Exception:  # pragma: no cover - conservative fallback
        cap = 64 * 1024 * 1024
    if cap >= 100 * 1024 * 1024:
        return 100 * 1024 * 1024
    return 48 * 1024 * 1024


_VMEM_LIMIT = _pick_vmem_limit()


def great_layer_kernel(src_ref, rel_ref, maskT_ref,
                       qw_ref, kw_ref, relwt_ref, relb_ref,
                       owth_ref, ob_ref,
                       w1t_ref, b1_ref, w2t_ref, b2_ref,
                       g1_ref, beta1_ref, g2_ref, beta2_ref,
                       out_ref,
                       ks_scr, v_scr,
                       *, num_heads, eps):
    """One (batch, query-tile) per grid step; everything lives in VMEM."""
    L, E = ks_scr.shape
    TQ = out_ref.shape[1]
    hd = E // num_heads
    scale = 1.0 / float(hd) ** 0.5
    qi = pl.program_id(1)

    # ---- per-batch K / V, hoisted: computed once per batch element (q == 0
    # runs first because the q axis is innermost and marked "arbitrary") ----
    @pl.when(qi == 0)
    def _():
        xk_bf = src_ref[0].astype(jnp.bfloat16)                       # (L, E)
        k = jnp.dot(xk_bf, kw_ref[...], preferred_element_type=jnp.float32)
        ks_scr[...] = k * scale                                       # fold 1/sqrt(hd)
        # Faithful quirk of the reference module: V reuses q_proj_weight.
        v_scr[...] = jnp.dot(xk_bf, qw_ref[...],
                             preferred_element_type=jnp.float32).astype(jnp.bfloat16)

    # ---- query rows for this tile, sliced from the resident full block ----
    q0 = pl.multiple_of(qi * TQ, TQ)
    xq = src_ref[0, pl.ds(q0, TQ), :]                                 # (TQ, E) f32 (residual)
    xq_bf = xq.astype(jnp.bfloat16)

    Ks = ks_scr[...]                                                  # (L, E) f32
    V_bf = v_scr[...]                                                 # (L, E) bf16

    # ---- Q projection (bf16 x bf16, f32 acc); fold relation bias into Q:
    # relb only reaches the logits through (Q + relb + R) * Ks summed per head.
    Qb = jnp.dot(xq_bf, qw_ref[...],
                 preferred_element_type=jnp.float32) + relb_ref[...]  # (TQ, E)

    # ---- relation projection: ONE bf16 x bf16 MXU matmul over the full E ----
    rel = rel_ref[0]                                                  # (TQ, L, E) bf16
    R = jnp.dot(rel.reshape(TQ * L, E), relwt_ref[...],
                preferred_element_type=jnp.float32).reshape(TQ, L, E)

    # ---- all head logits in ONE matmul against the 0/1 head mask ----
    # logits[h,q,k] = sum_e (Qb[q,e] + R[q,k,e]) * Ks[k,e] * mask[h,e]
    QRK = ((R + Qb[:, None, :]) * Ks[None, :, :]).astype(jnp.bfloat16)
    logits = jax.lax.dot_general(
        maskT_ref[...], QRK.reshape(TQ * L, E),
        dimension_numbers=(((1,), (1,)), ((), ())),
        preferred_element_type=jnp.float32).reshape(num_heads, TQ, L)  # (H, TQ, L)

    # ---- softmax over keys (lane-dense last axis), f32 statistics ----
    logits = logits - jnp.max(logits, axis=-1, keepdims=True)
    p = jnp.exp(logits)
    p = p * pl.reciprocal(jnp.sum(p, axis=-1, keepdims=True), approx=True)
    p_bf = p.astype(jnp.bfloat16)                                     # (H, TQ, L)

    # ---- attention output with out_proj folded per head (no lane concat) ----
    attn = None
    for h in range(num_heads):                                        # H is small & static
        s = h * hd
        o_h = jnp.dot(p_bf[h], V_bf[:, s:s + hd],
                      preferred_element_type=jnp.float32)             # (TQ, hd)
        contrib = jnp.dot(o_h.astype(jnp.bfloat16), owth_ref[h],
                          preferred_element_type=jnp.float32)         # (TQ, E)
        attn = contrib if attn is None else attn + contrib
    attn = attn + ob_ref[...]

    # ---- residual + LayerNorm 1 (f32 statistics) ----
    x1 = xq + attn
    mu = jnp.mean(x1, axis=-1, keepdims=True)
    var = jnp.mean((x1 - mu) ** 2, axis=-1, keepdims=True)
    x1 = (x1 - mu) * jax.lax.rsqrt(var + eps) * g1_ref[...] + beta1_ref[...]

    # ---- feed-forward: linear1 -> relu -> linear2 (bf16 matmuls, f32 acc) ----
    h1 = jnp.dot(x1.astype(jnp.bfloat16), w1t_ref[...],
                 preferred_element_type=jnp.float32) + b1_ref[...]
    h1 = jnp.maximum(h1, 0.0)
    ff = jnp.dot(h1.astype(jnp.bfloat16), w2t_ref[...],
                 preferred_element_type=jnp.float32) + b2_ref[...]

    # ---- residual + LayerNorm 2 ----
    x2 = x1 + ff
    mu2 = jnp.mean(x2, axis=-1, keepdims=True)
    var2 = jnp.mean((x2 - mu2) ** 2, axis=-1, keepdims=True)
    out = (x2 - mu2) * jax.lax.rsqrt(var2 + eps) * g2_ref[...] + beta2_ref[...]

    out_ref[0] = out.astype(out_ref.dtype)


@functools.partial(jax.jit, static_argnames=("nhead", "eps", "tq"))
def great_layer(src_lbe, relation, params, nhead=4, eps=1e-5, tq=128):
    """src_lbe: (L, B, E) as in torch batch_first=False; relation: (B, L, L, E).

    Pick `tq` so that roughly 3 * tq*L*E*4 bytes (double-buffered bf16 relation
    tile + one f32 QRK slab) fits comfortably under the per-generation VMEM
    limit.  Note: with the q axis "arbitrary", megacore parallelism comes only
    from the batch axis (fine whenever B >= number of TensorCores).
    """
    src = jnp.transpose(src_lbe, (1, 0, 2)).astype(jnp.float32)       # (B, L, E)
    B, L, E = src.shape
    FF = params["w1t"].shape[1]
    assert E % nhead == 0
    hd = E // nhead
    tq = min(int(tq), L)
    assert L % tq == 0, "query tile must divide L"
    assert tq == L or tq % 8 == 0, "query tile must be a sublane multiple"

    # bf16 in HBM: relation dominates DMA traffic; weights also halve theirs.
    rel_bf = relation.astype(jnp.bfloat16)
    qw = params["qw"].astype(jnp.bfloat16)
    kw = params["kw"].astype(jnp.bfloat16)
    relwt = params["relwt"].astype(jnp.bfloat16)
    owth = params["owt"].reshape(nhead, hd, E).astype(jnp.bfloat16)   # per-head out_proj
    w1t = params["w1t"].astype(jnp.bfloat16)
    w2t = params["w2t"].astype(jnp.bfloat16)

    # Static 0/1 head-membership mask, (H, E); exact in bf16.
    maskT = (jnp.arange(E)[None, :] // hd
             == jnp.arange(nhead)[:, None]).astype(jnp.bfloat16)

    kernel = functools.partial(great_layer_kernel, num_heads=nhead, eps=eps)

    def wspec(shape):
        nd = len(shape)
        return pl.BlockSpec(shape, lambda *_args, _nd=nd: (0,) * _nd)

    out = pl.pallas_call(
        kernel,
        out_shape=jax.ShapeDtypeStruct((B, L, E), jnp.float32),
        grid_spec=pltpu.PrefetchScalarGridSpec(
            num_scalar_prefetch=0,
            grid=(B, L // tq),
            in_specs=[
                pl.BlockSpec((1, L, E), lambda b, q: (b, 0, 0)),         # src, full sequence
                pl.BlockSpec((1, tq, L, E), lambda b, q: (b, q, 0, 0)),  # relation tile (bf16)
                wspec((nhead, E)),      # head mask (0/1)
                wspec((E, E)),          # q_proj_weight
                wspec((E, E)),          # k_proj_weight
                wspec((E, E)),          # relation_project.weight^T
                wspec((1, E)),          # relation_project.bias
                wspec((nhead, hd, E)),  # out_proj.weight^T, split per head
                wspec((1, E)),          # out_proj.bias
                wspec((E, FF)),         # linear1.weight^T
                wspec((1, FF)),         # linear1.bias
                wspec((FF, E)),         # linear2.weight^T
                wspec((1, E)),          # linear2.bias
                wspec((1, E)),          # norm1.weight
                wspec((1, E)),          # norm1.bias
                wspec((1, E)),          # norm2.weight
                wspec((1, E)),          # norm2.bias
            ],
            out_specs=pl.BlockSpec((1, tq, E), lambda b, q: (b, q, 0)),
            scratch_shapes=[
                pltpu.VMEM((L, E), jnp.float32),    # Ks (scale folded), per batch
                pltpu.VMEM((L, E), jnp.bfloat16),   # V, per batch
            ],
        ),
        compiler_params=pltpu.CompilerParams(
            dimension_semantics=("parallel", "arbitrary"),
            vmem_limit_bytes=_VMEM_LIMIT),
    )(src, rel_bf, maskT,
      qw, kw, relwt, params["relb"], owth, params["ob"],
      w1t, params["b1"], w2t, params["b2"],
      params["g1"], params["beta1"], params["g2"], params["beta2"])

    return jnp.transpose(out, (1, 0, 2))      # back to (L, B, E)


# ---------------- plain-JAX references (mirror the PyTorch forward) ----------
def _layernorm(x, g, b, eps):
    mu = jnp.mean(x, axis=-1, keepdims=True)
    var = jnp.mean((x - mu) ** 2, axis=-1, keepdims=True)
    return (x - mu) * jax.lax.rsqrt(var + eps) * g + b


def great_layer_ref(src_lbe, relation, params, nhead, eps=1e-5):
    """Pure float32 reference of the PyTorch module (no quantization)."""
    src = jnp.transpose(src_lbe, (1, 0, 2))
    B, L, E = src.shape
    hd = E // nhead
    r = relation @ params["relwt"] + params["relb"][0]
    q = (src @ params["qw"]).reshape(B, L, nhead, hd)
    k = (src @ params["kw"]).reshape(B, L, nhead, hd)
    v = (src @ params["qw"]).reshape(B, L, nhead, hd)   # v uses q_proj_weight
    qq = q[:, :, None] + r.reshape(B, L, L, nhead, hd)
    a = jnp.einsum('bqkhe,bkhe->bqkh', qq, k) / (hd ** 0.5)
    a = jax.nn.softmax(a, axis=2)
    ao = jnp.einsum('bqkh,bkhe->bqhe', a, v).reshape(B, L, E)
    ao = ao @ params["owt"] + params["ob"][0]
    x = _layernorm(src + ao, params["g1"][0], params["beta1"][0], eps)
    ff = jnp.maximum(x @ params["w1t"] + params["b1"][0], 0.0) @ params["w2t"] + params["b2"][0]
    x = _layernorm(x + ff, params["g2"][0], params["beta2"][0], eps)
    return jnp.transpose(x, (1, 0, 2))


def great_layer_ref_mixed(src_lbe, relation, params, nhead, eps=1e-5):
    """Reference that emulates the kernel's bf16/f32 mixed precision (tight check)."""
    bf = lambda a: a.astype(jnp.bfloat16)
    f32 = jnp.float32
    src = jnp.transpose(src_lbe, (1, 0, 2)).astype(f32)
    B, L, E = src.shape
    hd = E // nhead
    scale = 1.0 / float(hd) ** 0.5
    qw, kw, relwt = bf(params["qw"]), bf(params["kw"]), bf(params["relwt"])
    owt, w1t, w2t = bf(params["owt"]), bf(params["w1t"]), bf(params["w2t"])
    src_bf, rel_bf = bf(src), bf(relation)

    Q = jnp.einsum('ble,ef->blf', src_bf, qw, preferred_element_type=f32)
    K = jnp.einsum('ble,ef->blf', src_bf, kw, preferred_element_type=f32)
    V = bf(jnp.einsum('ble,ef->blf', src_bf, qw, preferred_element_type=f32))
    Ks = K * scale
    R = jnp.einsum('bqke,ef->bqkf', rel_bf, relwt, preferred_element_type=f32)
    Qb = Q + params["relb"][0]
    QRK = bf((R + Qb[:, :, None, :]) * Ks[:, None, :, :])
    maskT = (jnp.arange(E)[None, :] // hd
             == jnp.arange(nhead)[:, None]).astype(jnp.bfloat16)
    logits = jnp.einsum('bqke,he->bhqk', QRK, maskT, preferred_element_type=f32)
    logits = logits - logits.max(-1, keepdims=True)
    p = jnp.exp(logits)
    p = p / p.sum(-1, keepdims=True)
    o = jnp.einsum('bhqk,bkhd->bhqd', bf(p), V.reshape(B, L, nhead, hd),
                   preferred_element_type=f32)
    attn = jnp.einsum('bhqd,hde->bqe', bf(o), owt.reshape(nhead, hd, E),
                      preferred_element_type=f32) + params["ob"][0]
    x1 = _layernorm(src + attn, params["g1"][0], params["beta1"][0], eps)
    h1 = jnp.maximum(jnp.einsum('bqe,ef->bqf', bf(x1), w1t,
                                preferred_element_type=f32) + params["b1"][0], 0.0)
    ff = jnp.einsum('bqf,fe->bqe', bf(h1), w2t,
                    preferred_element_type=f32) + params["b2"][0]
    out = _layernorm(x1 + ff, params["g2"][0], params["beta2"][0], eps)
    return jnp.transpose(out, (1, 0, 2))


def init_params(key, d_model, dim_ff):
    ks = jax.random.split(key, 12)
    s_e = 1.0 / (d_model ** 0.5)
    s_f = 1.0 / (dim_ff ** 0.5)
    p = {
        "qw":    jax.random.normal(ks[0], (d_model, d_model)) * s_e,
        "kw":    jax.random.normal(ks[1], (d_model, d_model)) * s_e,
        "relwt": jax.random.normal(ks[2], (d_model, d_model)) * s_e,
        "relb":  jax.random.normal(ks[3], (1, d_model)) * 0.02,
        "owt":   jax.random.normal(ks[4], (d_model, d_model)) * s_e,
        "ob":    jax.random.normal(ks[5], (1, d_model)) * 0.02,
        "w1t":   jax.random.normal(ks[6], (d_model, dim_ff)) * s_e,
        "b1":    jax.random.normal(ks[7], (1, dim_ff)) * 0.02,
        "w2t":   jax.random.normal(ks[8], (dim_ff, d_model)) * s_f,
        "b2":    jax.random.normal(ks[9], (1, d_model)) * 0.02,
        "g1":    jnp.ones((1, d_model)) + 0.01 * jax.random.normal(ks[10], (1, d_model)),
        "beta1": jnp.zeros((1, d_model)),
        "g2":    jnp.ones((1, d_model)) + 0.01 * jax.random.normal(ks[11], (1, d_model)),
        "beta2": jnp.zeros((1, d_model)),
    }
    return {k: v.astype(jnp.float32) for k, v in p.items()}


if __name__ == "__main__":
    B, L, E, H, FF = 2, 16, 32, 4, 64
    TQ = 8                              # two query tiles per batch element
    key = jax.random.PRNGKey(0)
    k_src, k_rel, k_p = jax.random.split(key, 3)

    src = jax.random.normal(k_src, (L, B, E), jnp.float32)          # (L, B, E), batch_first=False
    relation = jax.random.normal(k_rel, (B, L, L, E), jnp.float32)  # (B, L, L, E)
    params = init_params(k_p, E, FF)

    out = great_layer(src, relation, params, nhead=H, tq=TQ)
    out = jax.block_until_ready(out)
    assert out.shape == (L, B, E)

    # (1) structural check: reference that emulates the kernel's mixed
    #     bf16/f32 precision -> tight tolerance (only approx-reciprocal and
    #     accumulation-order differences remain).
    ref_mixed = great_layer_ref_mixed(src, relation, params, H)
    ok_mixed = bool(jnp.allclose(out, ref_mixed, atol=2e-2, rtol=2e-2))

    # (2) end-to-end check vs. pure f32 reference; looser tolerance absorbs the
    #     bf16 quantization of the relation tensor / weights / activations.
    ref_f32 = great_layer_ref(src, relation, params, H)
    ok_full = bool(jnp.allclose(out, ref_f32, atol=1e-1, rtol=1e-1))

    if not (ok_mixed and ok_full):
        raise SystemExit("KERNEL_MISMATCH")
    print("KERNEL_OK")
</pallas_src>

<mosaic_0001>
module attributes {stable_mosaic.version = 11 : i64} {
  func.func @great_layer_kernel(%arg0: i32, %arg1: i32, %arg2: memref<1x16x32xf32, #tpu.memory_space<vmem>>, %arg3: memref<1x8x16x32xbf16, #tpu.memory_space<vmem>>, %arg4: memref<4x32xbf16, #tpu.memory_space<vmem>>, %arg5: memref<32x32xbf16, #tpu.memory_space<vmem>>, %arg6: memref<32x32xbf16, #tpu.memory_space<vmem>>, %arg7: memref<32x32xbf16, #tpu.memory_space<vmem>>, %arg8: memref<1x32xf32, #tpu.memory_space<vmem>>, %arg9: memref<4x8x32xbf16, #tpu.memory_space<vmem>>, %arg10: memref<1x32xf32, #tpu.memory_space<vmem>>, %arg11: memref<32x64xbf16, #tpu.memory_space<vmem>>, %arg12: memref<1x64xf32, #tpu.memory_space<vmem>>, %arg13: memref<64x32xbf16, #tpu.memory_space<vmem>>, %arg14: memref<1x32xf32, #tpu.memory_space<vmem>>, %arg15: memref<1x32xf32, #tpu.memory_space<vmem>>, %arg16: memref<1x32xf32, #tpu.memory_space<vmem>>, %arg17: memref<1x32xf32, #tpu.memory_space<vmem>>, %arg18: memref<1x32xf32, #tpu.memory_space<vmem>>, %arg19: memref<1x8x32xf32, #tpu.memory_space<vmem>>, %arg20: memref<16x32xf32, #tpu.memory_space<vmem>>, %arg21: memref<16x32xbf16, #tpu.memory_space<vmem>>) attributes {dimension_semantics = [#tpu.dimension_semantics<parallel>, #tpu.dimension_semantics<arbitrary>], iteration_bounds = array<i64: 2, 2>, scalar_prefetch = 0 : i64, scratch_operands = 2 : i64, tpu.core_type = #tpu.core_type<tc>, window_params = [{transform_indices = @transform_0, window_bounds = array<i64: 1, 16, 32>}, {transform_indices = @transform_1, window_bounds = array<i64: 1, 8, 16, 32>}, {pipeline_mode = #tpu.pipeline_mode<synchronous>, transform_indices = @transform_2, window_bounds = array<i64: 4, 32>}, {pipeline_mode = #tpu.pipeline_mode<synchronous>, transform_indices = @transform_3, window_bounds = array<i64: 32, 32>}, {pipeline_mode = #tpu.pipeline_mode<synchronous>, transform_indices = @transform_4, window_bounds = array<i64: 32, 32>}, {pipeline_mode = #tpu.pipeline_mode<synchronous>, transform_indices = @transform_5, window_bounds = array<i64: 32, 32>}, {pipeline_mode = #tpu.pipeline_mode<synchronous>, transform_indices = @transform_6, window_bounds = array<i64: 1, 32>}, {pipeline_mode = #tpu.pipeline_mode<synchronous>, transform_indices = @transform_7, window_bounds = array<i64: 4, 8, 32>}, {pipeline_mode = #tpu.pipeline_mode<synchronous>, transform_indices = @transform_8, window_bounds = array<i64: 1, 32>}, {pipeline_mode = #tpu.pipeline_mode<synchronous>, transform_indices = @transform_9, window_bounds = array<i64: 32, 64>}, {pipeline_mode = #tpu.pipeline_mode<synchronous>, transform_indices = @transform_10, window_bounds = array<i64: 1, 64>}, {pipeline_mode = #tpu.pipeline_mode<synchronous>, transform_indices = @transform_11, window_bounds = array<i64: 64, 32>}, {pipeline_mode = #tpu.pipeline_mode<synchronous>, transform_indices = @transform_12, window_bounds = array<i64: 1, 32>}, {pipeline_mode = #tpu.pipeline_mode<synchronous>, transform_indices = @transform_13, window_bounds = array<i64: 1, 32>}, {pipeline_mode = #tpu.pipeline_mode<synchronous>, transform_indices = @transform_14, window_bounds = array<i64: 1, 32>}, {pipeline_mode = #tpu.pipeline_mode<synchronous>, transform_indices = @transform_15, window_bounds = array<i64: 1, 32>}, {pipeline_mode = #tpu.pipeline_mode<synchronous>, transform_indices = @transform_16, window_bounds = array<i64: 1, 32>}, {transform_indices = @transform_17, window_bounds = array<i64: 1, 8, 32>}]} {
    %c0_i32 = arith.constant 0 : i32
    %0 = arith.cmpi eq, %arg1, %c0_i32 : i32
    %1 = arith.extui %0 : i1 to i32
    %c0_i32_0 = arith.constant 0 : i32
    %2 = arith.cmpi ne, %1, %c0_i32_0 : i32
    scf.if %2 {
      %c0_73 = arith.constant 0 : index
      %c0_74 = arith.constant 0 : index
      %c0_75 = arith.constant 0 : index
      %149 = vector.load %arg2[%c0_73, %c0_74, %c0_75] : memref<1x16x32xf32, #tpu.memory_space<vmem>>, vector<1x16x32xf32>
      %150 = vector.shape_cast %149 : vector<1x16x32xf32> to vector<16x32xf32>
      %151 = arith.truncf %150 : vector<16x32xf32> to vector<16x32xbf16>
      %c0_76 = arith.constant 0 : index
      %c0_77 = arith.constant 0 : index
      %152 = vector.load %arg6[%c0_76, %c0_77] : memref<32x32xbf16, #tpu.memory_space<vmem>>, vector<32x32xbf16>
      %cst_78 = arith.constant dense<0.000000e+00> : vector<16x32xf32>
      %153 = tpu.matmul %151, %152, %cst_78 {dimension_numbers = #tpu.dot_dimension_numbers<[1], [0], [0], [1], [0, 0, 1, 1], [], []>} : vector<16x32xbf16>, vector<32x32xbf16>, vector<16x32xf32> -> vector<16x32xf32>
      %cst_79 = arith.constant 0.353553385 : f32
      %154 = vector.broadcast %cst_79 : f32 to vector<16x32xf32>
      %155 = arith.mulf %153, %154 : vector<16x32xf32>
      %c0_80 = arith.constant 0 : index
      %c0_81 = arith.constant 0 : index
      %156 = vector.load %arg20[%c0_80, %c0_81] : memref<16x32xf32, #tpu.memory_space<vmem>>, vector<16x32xf32>
      tpu.vector_store %arg20[%c0_80, %c0_81], %155 {strides = array<i32>} : memref<16x32xf32, #tpu.memory_space<vmem>>, vector<16x32xf32>,
      %c0_82 = arith.constant 0 : index
      %c0_83 = arith.constant 0 : index
      %157 = vector.load %arg5[%c0_82, %c0_83] : memref<32x32xbf16, #tpu.memory_space<vmem>>, vector<32x32xbf16>
      %cst_84 = arith.constant dense<0.000000e+00> : vector<16x32xf32>
      %158 = tpu.matmul %151, %157, %cst_84 {dimension_numbers = #tpu.dot_dimension_numbers<[1], [0], [0], [1], [0, 0, 1, 1], [], []>} : vector<16x32xbf16>, vector<32x32xbf16>, vector<16x32xf32> -> vector<16x32xf32>
      %159 = arith.truncf %158 : vector<16x32xf32> to vector<16x32xbf16>
      %c0_85 = arith.constant 0 : index
      %c0_86 = arith.constant 0 : index
      %160 = vector.load %arg21[%c0_85, %c0_86] : memref<16x32xbf16, #tpu.memory_space<vmem>>, vector<16x32xbf16>
      tpu.vector_store %arg21[%c0_85, %c0_86], %159 {strides = array<i32>} : memref<16x32xbf16, #tpu.memory_space<vmem>>, vector<16x32xbf16>,
    } else {
    }
    %c8_i32 = arith.constant 8 : i32
    %3 = arith.muli %arg1, %c8_i32 : i32
    %4 = tpu.assume_multiple %3, 8 : i32
    %c0 = arith.constant 0 : index
    %5 = arith.index_cast %4 : i32 to index
    %c0_1 = arith.constant 0 : index
    %6 = vector.load %arg2[%c0, %5, %c0_1] : memref<1x16x32xf32, #tpu.memory_space<vmem>>, vector<1x8x32xf32>
    %7 = vector.shape_cast %6 : vector<1x8x32xf32> to vector<8x32xf32>
    %8 = arith.truncf %7 : vector<8x32xf32> to vector<8x32xbf16>
    %c0_2 = arith.constant 0 : index
    %c0_3 = arith.constant 0 : index
    %9 = vector.load %arg20[%c0_2, %c0_3] : memref<16x32xf32, #tpu.memory_space<vmem>>, vector<16x32xf32>
    %c0_4 = arith.constant 0 : index
    %c0_5 = arith.constant 0 : index
    %10 = vector.load %arg21[%c0_4, %c0_5] : memref<16x32xbf16, #tpu.memory_space<vmem>>, vector<16x32xbf16>
    %c0_6 = arith.constant 0 : index
    %c0_7 = arith.constant 0 : index
    %11 = vector.load %arg5[%c0_6, %c0_7] : memref<32x32xbf16, #tpu.memory_space<vmem>>, vector<32x32xbf16>
    %cst = arith.constant dense<0.000000e+00> : vector<8x32xf32>
    %12 = tpu.matmul %8, %11, %cst {dimension_numbers = #tpu.dot_dimension_numbers<[1], [0], [0], [1], [0, 0, 1, 1], [], []>} : vector<8x32xbf16>, vector<32x32xbf16>, vector<8x32xf32> -> vector<8x32xf32>
    %c0_8 = arith.constant 0 : index
    %c0_9 = arith.constant 0 : index
    %13 = vector.load %arg8[%c0_8, %c0_9] : memref<1x32xf32, #tpu.memory_space<vmem>>, vector<1x32xf32>
    %14 = vector.broadcast %13 : vector<1x32xf32> to vector<8x32xf32>
    %15 = arith.addf %12, %14 : vector<8x32xf32>
    %c0_10 = arith.constant 0 : index
    %c0_11 = arith.constant 0 : index
    %c0_12 = arith.constant 0 : index
    %c0_13 = arith.constant 0 : index
    %16 = vector.load %arg3[%c0_10, %c0_11, %c0_12, %c0_13] : memref<1x8x16x32xbf16, #tpu.memory_space<vmem>>, vector<1x8x16x32xbf16>
    %17 = vector.shape_cast %16 : vector<1x8x16x32xbf16> to vector<8x16x32xbf16>
    %18 = vector.shape_cast %17 : vector<8x16x32xbf16> to vector<128x32xbf16>
    %c0_14 = arith.constant 0 : index
    %c0_15 = arith.constant 0 : index
    %19 = vector.load %arg7[%c0_14, %c0_15] : memref<32x32xbf16, #tpu.memory_space<vmem>>, vector<32x32xbf16>
    %cst_16 = arith.constant dense<0.000000e+00> : vector<128x32xf32>
    %20 = tpu.matmul %18, %19, %cst_16 {dimension_numbers = #tpu.dot_dimension_numbers<[1], [0], [0], [1], [0, 0, 1, 1], [], []>} : vector<128x32xbf16>, vector<32x32xbf16>, vector<128x32xf32> -> vector<128x32xf32>
    %21 = vector.shape_cast %20 : vector<128x32xf32> to vector<8x16x32xf32>
    %22 = vector.shape_cast %15 : vector<8x32xf32> to vector<8x1x32xf32>
    %23 = vector.broadcast %22 : vector<8x1x32xf32> to vector<8x16x32xf32>
    %24 = arith.addf %21, %23 : vector<8x16x32xf32>
    %25 = vector.shape_cast %9 : vector<16x32xf32> to vector<1x16x32xf32>
    %26 = vector.broadcast %25 : vector<1x16x32xf32> to vector<8x16x32xf32>
    %27 = arith.mulf %24, %26 : vector<8x16x32xf32>
    %28 = arith.truncf %27 : vector<8x16x32xf32> to vector<8x16x32xbf16>
    %c0_17 = arith.constant 0 : index
    %c0_18 = arith.constant 0 : index
    %29 = vector.load %arg4[%c0_17, %c0_18] : memref<4x32xbf16, #tpu.memory_space<vmem>>, vector<4x32xbf16>
    %30 = vector.shape_cast %28 : vector<8x16x32xbf16> to vector<128x32xbf16>
    %cst_19 = arith.constant dense<0.000000e+00> : vector<4x128xf32>
    %31 = tpu.matmul %29, %30, %cst_19 {dimension_numbers = #tpu.dot_dimension_numbers<[1], [1], [0], [0], [0, 0, 1, 0], [], []>} : vector<4x32xbf16>, vector<128x32xbf16>, vector<4x128xf32> -> vector<4x128xf32>
    %32 = vector.shape_cast %31 : vector<4x128xf32> to vector<4x8x16xf32>
    %cst_20 = arith.constant dense<0xFF800000> : vector<4x8xf32>
    %33 = vector.multi_reduction <maximumf>, %32, %cst_20 [2] : vector<4x8x16xf32> to vector<4x8xf32>
    %34 = vector.shape_cast %33 : vector<4x8xf32> to vector<4x8x1xf32>
    %35 = vector.broadcast %34 : vector<4x8x1xf32> to vector<4x8x16xf32>
    %36 = arith.subf %32, %35 : vector<4x8x16xf32>
    %37 = math.exp %36 : vector<4x8x16xf32>
    %cst_21 = arith.constant dense<0.000000e+00> : vector<4x8xf32>
    %38 = vector.multi_reduction <add>, %37, %cst_21 [2] : vector<4x8x16xf32> to vector<4x8xf32>
    %39 = vector.shape_cast %38 : vector<4x8xf32> to vector<4x8x1xf32>
    %40 = tpu.reciprocal %39 {approx = true} : vector<4x8x1xf32> -> vector<4x8x1xf32>
    %41 = vector.broadcast %40 : vector<4x8x1xf32> to vector<4x8x16xf32>
    %42 = arith.mulf %37, %41 : vector<4x8x16xf32>
    %43 = arith.truncf %42 : vector<4x8x16xf32> to vector<4x8x16xbf16>
    %44 = vector.extract_strided_slice %43 {offsets = [0, 0, 0], sizes = [1, 8, 16], strides = [1, 1, 1]} : vector<4x8x16xbf16> to vector<1x8x16xbf16>
    %45 = vector.shape_cast %44 : vector<1x8x16xbf16> to vector<8x16xbf16>
    %46 = vector.extract_strided_slice %10 {offsets = [0, 0], sizes = [16, 8], strides = [1, 1]} : vector<16x32xbf16> to vector<16x8xbf16>
    %cst_22 = arith.constant dense<0.000000e+00> : vector<8x8xf32>
    %47 = tpu.matmul %45, %46, %cst_22 {dimension_numbers = #tpu.dot_dimension_numbers<[1], [0], [0], [1], [0, 0, 1, 1], [], []>} : vector<8x16xbf16>, vector<16x8xbf16>, vector<8x8xf32> -> vector<8x8xf32>
    %48 = arith.truncf %47 : vector<8x8xf32> to vector<8x8xbf16>
    %c0_23 = arith.constant 0 : index
    %c0_24 = arith.constant 0 : index
    %c0_25 = arith.constant 0 : index
    %49 = vector.load %arg9[%c0_23, %c0_24, %c0_25] : memref<4x8x32xbf16, #tpu.memory_space<vmem>>, vector<1x8x32xbf16>
    %50 = vector.shape_cast %49 : vector<1x8x32xbf16> to vector<8x32xbf16>
    %cst_26 = arith.constant dense<0.000000e+00> : vector<8x32xf32>
    %51 = tpu.matmul %48, %50, %cst_26 {dimension_numbers = #tpu.dot_dimension_numbers<[1], [0], [0], [1], [0, 0, 1, 1], [], []>} : vector<8x8xbf16>, vector<8x32xbf16>, vector<8x32xf32> -> vector<8x32xf32>
    %52 = vector.extract_strided_slice %43 {offsets = [1, 0, 0], sizes = [1, 8, 16], strides = [1, 1, 1]} : vector<4x8x16xbf16> to vector<1x8x16xbf16>
    %53 = vector.shape_cast %52 : vector<1x8x16xbf16> to vector<8x16xbf16>
    %54 = vector.extract_strided_slice %10 {offsets = [0, 8], sizes = [16, 8], strides = [1, 1]} : vector<16x32xbf16> to vector<16x8xbf16>
    %cst_27 = arith.constant dense<0.000000e+00> : vector<8x8xf32>
    %55 = tpu.matmul %53, %54, %cst_27 {dimension_numbers = #tpu.dot_dimension_numbers<[1], [0], [0], [1], [0, 0, 1, 1], [], []>} : vector<8x16xbf16>, vector<16x8xbf16>, vector<8x8xf32> -> vector<8x8xf32>
    %56 = arith.truncf %55 : vector<8x8xf32> to vector<8x8xbf16>
    %c1 = arith.constant 1 : index
    %c0_28 = arith.constant 0 : index
    %c0_29 = arith.constant 0 : index
    %57 = vector.load %arg9[%c1, %c0_28, %c0_29] : memref<4x8x32xbf16, #tpu.memory_space<vmem>>, vector<1x8x32xbf16>
    %58 = vector.shape_cast %57 : vector<1x8x32xbf16> to vector<8x32xbf16>
    %cst_30 = arith.constant dense<0.000000e+00> : vector<8x32xf32>
    %59 = tpu.matmul %56, %58, %cst_30 {dimension_numbers = #tpu.dot_dimension_numbers<[1], [0], [0], [1], [0, 0, 1, 1], [], []>} : vector<8x8xbf16>, vector<8x32xbf16>, vector<8x32xf32> -> vector<8x32xf32>
    %60 = arith.addf %51, %59 : vector<8x32xf32>
    %61 = vector.extract_strided_slice %43 {offsets = [2, 0, 0], sizes = [1, 8, 16], strides = [1, 1, 1]} : vector<4x8x16xbf16> to vector<1x8x16xbf16>
    %62 = vector.shape_cast %61 : vector<1x8x16xbf16> to vector<8x16xbf16>
    %63 = vector.extract_strided_slice %10 {offsets = [0, 16], sizes = [16, 8], strides = [1, 1]} : vector<16x32xbf16> to vector<16x8xbf16>
    %cst_31 = arith.constant dense<0.000000e+00> : vector<8x8xf32>
    %64 = tpu.matmul %62, %63, %cst_31 {dimension_numbers = #tpu.dot_dimension_numbers<[1], [0], [0], [1], [0, 0, 1, 1], [], []>} : vector<8x16xbf16>, vector<16x8xbf16>, vector<8x8xf32> -> vector<8x8xf32>
    %65 = arith.truncf %64 : vector<8x8xf32> to vector<8x8xbf16>
    %c2 = arith.constant 2 : index
    %c0_32 = arith.constant 0 : index
    %c0_33 = arith.constant 0 : index
    %66 = vector.load %arg9[%c2, %c0_32, %c0_33] : memref<4x8x32xbf16, #tpu.memory_space<vmem>>, vector<1x8x32xbf16>
    %67 = vector.shape_cast %66 : vector<1x8x32xbf16> to vector<8x32xbf16>
    %cst_34 = arith.constant dense<0.000000e+00> : vector<8x32xf32>
    %68 = tpu.matmul %65, %67, %cst_34 {dimension_numbers = #tpu.dot_dimension_numbers<[1], [0], [0], [1], [0, 0, 1, 1], [], []>} : vector<8x8xbf16>, vector<8x32xbf16>, vector<8x32xf32> -> vector<8x32xf32>
    %69 = arith.addf %60, %68 : vector<8x32xf32>
    %70 = vector.extract_strided_slice %43 {offsets = [3, 0, 0], sizes = [1, 8, 16], strides = [1, 1, 1]} : vector<4x8x16xbf16> to vector<1x8x16xbf16>
    %71 = vector.shape_cast %70 : vector<1x8x16xbf16> to vector<8x16xbf16>
    %72 = vector.extract_strided_slice %10 {offsets = [0, 24], sizes = [16, 8], strides = [1, 1]} : vector<16x32xbf16> to vector<16x8xbf16>
    %cst_35 = arith.constant dense<0.000000e+00> : vector<8x8xf32>
    %73 = tpu.matmul %71, %72, %cst_35 {dimension_numbers = #tpu.dot_dimension_numbers<[1], [0], [0], [1], [0, 0, 1, 1], [], []>} : vector<8x16xbf16>, vector<16x8xbf16>, vector<8x8xf32> -> vector<8x8xf32>
    %74 = arith.truncf %73 : vector<8x8xf32> to vector<8x8xbf16>
    %c3 = arith.constant 3 : index
    %c0_36 = arith.constant 0 : index
    %c0_37 = arith.constant 0 : index
    %75 = vector.load %arg9[%c3, %c0_36, %c0_37] : memref<4x8x32xbf16, #tpu.memory_space<vmem>>, vector<1x8x32xbf16>
    %76 = vector.shape_cast %75 : vector<1x8x32xbf16> to vector<8x32xbf16>
    %cst_38 = arith.constant dense<0.000000e+00> : vector<8x32xf32>
    %77 = tpu.matmul %74, %76, %cst_38 {dimension_numbers = #tpu.dot_dimension_numbers<[1], [0], [0], [1], [0, 0, 1, 1], [], []>} : vector<8x8xbf16>, vector<8x32xbf16>, vector<8x32xf32> -> vector<8x32xf32>
    %78 = arith.addf %69, %77 : vector<8x32xf32>
    %c0_39 = arith.constant 0 : index
    %c0_40 = arith.constant 0 : index
    %79 = vector.load %arg10[%c0_39, %c0_40] : memref<1x32xf32, #tpu.memory_space<vmem>>, vector<1x32xf32>
    %80 = vector.broadcast %79 : vector<1x32xf32> to vector<8x32xf32>
    %81 = arith.addf %78, %80 : vector<8x32xf32>
    %82 = arith.addf %7, %81 : vector<8x32xf32>
    %cst_41 = arith.constant dense<0.000000e+00> : vector<8xf32>
    %83 = vector.multi_reduction <add>, %82, %cst_41 [1] : vector<8x32xf32> to vector<8xf32>
    %84 = vector.shape_cast %83 : vector<8xf32> to vector<8x1xf32>
    %cst_42 = arith.constant 3.200000e+01 : f32
    %85 = vector.broadcast %cst_42 : f32 to vector<8x1xf32>
    %86 = arith.divf %84, %85 : vector<8x1xf32>
    %87 = vector.broadcast %86 : vector<8x1xf32> to vector<8x32xf32>
    %88 = arith.subf %82, %87 : vector<8x32xf32>
    %89 = arith.mulf %88, %88 : vector<8x32xf32>
    %cst_43 = arith.constant dense<0.000000e+00> : vector<8xf32>
    %90 = vector.multi_reduction <add>, %89, %cst_43 [1] : vector<8x32xf32> to vector<8xf32>
    %91 = vector.shape_cast %90 : vector<8xf32> to vector<8x1xf32>
    %cst_44 = arith.constant 3.200000e+01 : f32
    %92 = vector.broadcast %cst_44 : f32 to vector<8x1xf32>
    %93 = arith.divf %91, %92 : vector<8x1xf32>
    %94 = vector.broadcast %86 : vector<8x1xf32> to vector<8x32xf32>
    %95 = arith.subf %82, %94 : vector<8x32xf32>
    %cst_45 = arith.constant 9.99999974E-6 : f32
    %96 = vector.broadcast %cst_45 : f32 to vector<8x1xf32>
    %97 = arith.addf %93, %96 : vector<8x1xf32>
    %98 = math.rsqrt %97 : vector<8x1xf32>
    %99 = vector.broadcast %98 : vector<8x1xf32> to vector<8x32xf32>
    %100 = arith.mulf %95, %99 : vector<8x32xf32>
    %c0_46 = arith.constant 0 : index
    %c0_47 = arith.constant 0 : index
    %101 = vector.load %arg15[%c0_46, %c0_47] : memref<1x32xf32, #tpu.memory_space<vmem>>, vector<1x32xf32>
    %102 = vector.broadcast %101 : vector<1x32xf32> to vector<8x32xf32>
    %103 = arith.mulf %100, %102 : vector<8x32xf32>
    %c0_48 = arith.constant 0 : index
    %c0_49 = arith.constant 0 : index
    %104 = vector.load %arg16[%c0_48, %c0_49] : memref<1x32xf32, #tpu.memory_space<vmem>>, vector<1x32xf32>
    %105 = vector.broadcast %104 : vector<1x32xf32> to vector<8x32xf32>
    %106 = arith.addf %103, %105 : vector<8x32xf32>
    %107 = arith.truncf %106 : vector<8x32xf32> to vector<8x32xbf16>
    %c0_50 = arith.constant 0 : index
    %c0_51 = arith.constant 0 : index
    %108 = vector.load %arg11[%c0_50, %c0_51] : memref<32x64xbf16, #tpu.memory_space<vmem>>, vector<32x64xbf16>
    %cst_52 = arith.constant dense<0.000000e+00> : vector<8x64xf32>
    %109 = tpu.matmul %107, %108, %cst_52 {dimension_numbers = #tpu.dot_dimension_numbers<[1], [0], [0], [1], [0, 0, 1, 1], [], []>} : vector<8x32xbf16>, vector<32x64xbf16>, vector<8x64xf32> -> vector<8x64xf32>
    %c0_53 = arith.constant 0 : index
    %c0_54 = arith.constant 0 : index
    %110 = vector.load %arg12[%c0_53, %c0_54] : memref<1x64xf32, #tpu.memory_space<vmem>>, vector<1x64xf32>
    %111 = vector.broadcast %110 : vector<1x64xf32> to vector<8x64xf32>
    %112 = arith.addf %109, %111 : vector<8x64xf32>
    %cst_55 = arith.constant 0.000000e+00 : f32
    %113 = vector.broadcast %cst_55 : f32 to vector<8x64xf32>
    %114 = arith.maximumf %112, %113 : vector<8x64xf32>
    %115 = arith.truncf %114 : vector<8x64xf32> to vector<8x64xbf16>
    %c0_56 = arith.constant 0 : index
    %c0_57 = arith.constant 0 : index
    %116 = vector.load %arg13[%c0_56, %c0_57] : memref<64x32xbf16, #tpu.memory_space<vmem>>, vector<64x32xbf16>
    %cst_58 = arith.constant dense<0.000000e+00> : vector<8x32xf32>
    %117 = tpu.matmul %115, %116, %cst_58 {dimension_numbers = #tpu.dot_dimension_numbers<[1], [0], [0], [1], [0, 0, 1, 1], [], []>} : vector<8x64xbf16>, vector<64x32xbf16>, vector<8x32xf32> -> vector<8x32xf32>
    %c0_59 = arith.constant 0 : index
    %c0_60 = arith.constant 0 : index
    %118 = vector.load %arg14[%c0_59, %c0_60] : memref<1x32xf32, #tpu.memory_space<vmem>>, vector<1x32xf32>
    %119 = vector.broadcast %118 : vector<1x32xf32> to vector<8x32xf32>
    %120 = arith.addf %117, %119 : vector<8x32xf32>
    %121 = arith.addf %106, %120 : vector<8x32xf32>
    %cst_61 = arith.constant dense<0.000000e+00> : vector<8xf32>
    %122 = vector.multi_reduction <add>, %121, %cst_61 [1] : vector<8x32xf32> to vector<8xf32>
    %123 = vector.shape_cast %122 : vector<8xf32> to vector<8x1xf32>
    %cst_62 = arith.constant 3.200000e+01 : f32
    %124 = vector.broadcast %cst_62 : f32 to vector<8x1xf32>
    %125 = arith.divf %123, %124 : vector<8x1xf32>
    %126 = vector.broadcast %125 : vector<8x1xf32> to vector<8x32xf32>
    %127 = arith.subf %121, %126 : vector<8x32xf32>
    %128 = arith.mulf %127, %127 : vector<8x32xf32>
    %cst_63 = arith.constant dense<0.000000e+00> : vector<8xf32>
    %129 = vector.multi_reduction <add>, %128, %cst_63 [1] : vector<8x32xf32> to vector<8xf32>
    %130 = vector.shape_cast %129 : vector<8xf32> to vector<8x1xf32>
    %cst_64 = arith.constant 3.200000e+01 : f32
    %131 = vector.broadcast %cst_64 : f32 to vector<8x1xf32>
    %132 = arith.divf %130, %131 : vector<8x1xf32>
    %133 = vector.broadcast %125 : vector<8x1xf32> to vector<8x32xf32>
    %134 = arith.subf %121, %133 : vector<8x32xf32>
    %cst_65 = arith.constant 9.99999974E-6 : f32
    %135 = vector.broadcast %cst_65 : f32 to vector<8x1xf32>
    %136 = arith.addf %132, %135 : vector<8x1xf32>
    %137 = math.rsqrt %136 : vector<8x1xf32>
    %138 = vector.broadcast %137 : vector<8x1xf32> to vector<8x32xf32>
    %139 = arith.mulf %134, %138 : vector<8x32xf32>
    %c0_66 = arith.constant 0 : index
    %c0_67 = arith.constant 0 : index
    %140 = vector.load %arg17[%c0_66, %c0_67] : memref<1x32xf32, #tpu.memory_space<vmem>>, vector<1x32xf32>
    %141 = vector.broadcast %140 : vector<1x32xf32> to vector<8x32xf32>
    %142 = arith.mulf %139, %141 : vector<8x32xf32>
    %c0_68 = arith.constant 0 : index
    %c0_69 = arith.constant 0 : index
    %143 = vector.load %arg18[%c0_68, %c0_69] : memref<1x32xf32, #tpu.memory_space<vmem>>, vector<1x32xf32>
    %144 = vector.broadcast %143 : vector<1x32xf32> to vector<8x32xf32>
    %145 = arith.addf %142, %144 : vector<8x32xf32>
    %c0_70 = arith.constant 0 : index
    %c0_71 = arith.constant 0 : index
    %c0_72 = arith.constant 0 : index
    %146 = vector.load %arg19[%c0_70, %c0_71, %c0_72] : memref<1x8x32xf32, #tpu.memory_space<vmem>>, vector<1x8x32xf32>
    %147 = vector.shape_cast %146 : vector<1x8x32xf32> to vector<8x32xf32>
    %148 = vector.shape_cast %145 : vector<8x32xf32> to vector<1x8x32xf32>
    tpu.vector_store %arg19[%c0_70, %c0_71, %c0_72], %148 {strides = array<i32>} : memref<1x8x32xf32, #tpu.memory_space<vmem>>, vector<1x8x32xf32>,
    return
  }
  func.func @transform_0(%arg0: i32, %arg1: i32) -> (i32, i32, i32) {
    %c0_i32 = arith.constant 0 : i32
    %c0_i32_0 = arith.constant 0 : i32
    %c0_i32_1 = arith.constant 0 : i32
    return %arg0, %c0_i32, %c0_i32_0 : i32, i32, i32
  }
  func.func @transform_1(%arg0: i32, %arg1: i32) -> (i32, i32, i32, i32) {
    %c0_i32 = arith.constant 0 : i32
    %c0_i32_0 = arith.constant 0 : i32
    %c0_i32_1 = arith.constant 0 : i32
    return %arg0, %arg1, %c0_i32, %c0_i32_0 : i32, i32, i32, i32
  }
  func.func @transform_2(%arg0: i32, %arg1: i32) -> (i32, i32) {
    %c0_i32 = arith.constant 0 : i32
    %c0_i32_0 = arith.constant 0 : i32
    %c0_i32_1 = arith.constant 0 : i32
    return %c0_i32, %c0_i32_0 : i32, i32
  }
  func.func @transform_3(%arg0: i32, %arg1: i32) -> (i32, i32) {
    %c0_i32 = arith.constant 0 : i32
    %c0_i32_0 = arith.constant 0 : i32
    %c0_i32_1 = arith.constant 0 : i32
    return %c0_i32, %c0_i32_0 : i32, i32
  }
  func.func @transform_4(%arg0: i32, %arg1: i32) -> (i32, i32) {
    %c0_i32 = arith.constant 0 : i32
    %c0_i32_0 = arith.constant 0 : i32
    %c0_i32_1 = arith.constant 0 : i32
    return %c0_i32, %c0_i32_0 : i32, i32
  }
  func.func @transform_5(%arg0: i32, %arg1: i32) -> (i32, i32) {
    %c0_i32 = arith.constant 0 : i32
    %c0_i32_0 = arith.constant 0 : i32
    %c0_i32_1 = arith.constant 0 : i32
    return %c0_i32, %c0_i32_0 : i32, i32
  }
  func.func @transform_6(%arg0: i32, %arg1: i32) -> (i32, i32) {
    %c0_i32 = arith.constant 0 : i32
    %c0_i32_0 = arith.constant 0 : i32
    %c0_i32_1 = arith.constant 0 : i32
    return %c0_i32, %c0_i32_0 : i32, i32
  }
  func.func @transform_7(%arg0: i32, %arg1: i32) -> (i32, i32, i32) {
    %c0_i32 = arith.constant 0 : i32
    %c0_i32_0 = arith.constant 0 : i32
    %c0_i32_1 = arith.constant 0 : i32
    %c0_i32_2 = arith.constant 0 : i32
    return %c0_i32, %c0_i32_0, %c0_i32_1 : i32, i32, i32
  }
  func.func @transform_8(%arg0: i32, %arg1: i32) -> (i32, i32) {
    %c0_i32 = arith.constant 0 : i32
    %c0_i32_0 = arith.constant 0 : i32
    %c0_i32_1 = arith.constant 0 : i32
    return %c0_i32, %c0_i32_0 : i32, i32
  }
  func.func @transform_9(%arg0: i32, %arg1: i32) -> (i32, i32) {
    %c0_i32 = arith.constant 0 : i32
    %c0_i32_0 = arith.constant 0 : i32
    %c0_i32_1 = arith.constant 0 : i32
    return %c0_i32, %c0_i32_0 : i32, i32
  }
  func.func @transform_10(%arg0: i32, %arg1: i32) -> (i32, i32) {
    %c0_i32 = arith.constant 0 : i32
    %c0_i32_0 = arith.constant 0 : i32
    %c0_i32_1 = arith.constant 0 : i32
    return %c0_i32, %c0_i32_0 : i32, i32
  }
  func.func @transform_11(%arg0: i32, %arg1: i32) -> (i32, i32) {
    %c0_i32 = arith.constant 0 : i32
    %c0_i32_0 = arith.constant 0 : i32
    %c0_i32_1 = arith.constant 0 : i32
    return %c0_i32, %c0_i32_0 : i32, i32
  }
  func.func @transform_12(%arg0: i32, %arg1: i32) -> (i32, i32) {
    %c0_i32 = arith.constant 0 : i32
    %c0_i32_0 = arith.constant 0 : i32
    %c0_i32_1 = arith.constant 0 : i32
    return %c0_i32, %c0_i32_0 : i32, i32
  }
  func.func @transform_13(%arg0: i32, %arg1: i32) -> (i32, i32) {
    %c0_i32 = arith.constant 0 : i32
    %c0_i32_0 = arith.constant 0 : i32
    %c0_i32_1 = arith.constant 0 : i32
    return %c0_i32, %c0_i32_0 : i32, i32
  }
  func.func @transform_14(%arg0: i32, %arg1: i32) -> (i32, i32) {
    %c0_i32 = arith.constant 0 : i32
    %c0_i32_0 = arith.constant 0 : i32
    %c0_i32_1 = arith.constant 0 : i32
    return %c0_i32, %c0_i32_0 : i32, i32
  }
  func.func @transform_15(%arg0: i32, %arg1: i32) -> (i32, i32) {
    %c0_i32 = arith.constant 0 : i32
    %c0_i32_0 = arith.constant 0 : i32
    %c0_i32_1 = arith.constant 0 : i32
    return %c0_i32, %c0_i32_0 : i32, i32
  }
  func.func @transform_16(%arg0: i32, %arg1: i32) -> (i32, i32) {
    %c0_i32 = arith.constant 0 : i32
    %c0_i32_0 = arith.constant 0 : i32
    %c0_i32_1 = arith.constant 0 : i32
    return %c0_i32, %c0_i32_0 : i32, i32
  }
  func.func @transform_17(%arg0: i32, %arg1: i32) -> (i32, i32, i32) {
    %c0_i32 = arith.constant 0 : i32
    %c0_i32_0 = arith.constant 0 : i32
    return %arg0, %arg1, %c0_i32 : i32, i32, i32
  }
}

</mosaic_0001>

<bundles_post_ra>
// kernel: great_layer.1
= control target key start
LH: loop header
LB: loop body
LE: loop exit
PB: predicated region body
PF: predicated region fallthrough
CT: control target
= control target key end

     0   :  { %s1990_s24 = smov 0   ;;  %s1992_s25 = smov 0   ;;  %s2265_s0 = inlined_call_operand.vmem [shape: f32[2,16,32], index: 0, kind: input, shape index: {}]   ;;  %s2266_s1 = inlined_call_operand.vmem [shape: bf16[2,16,16,32], index: 1, kind: input, shape index: {}]   ;;  %s2267_s2 = inlined_call_operand.vmem [shape: bf16[4,32], index: 2, kind: input, shape index: {}]   ;;  %s2268_s3 = inlined_call_operand.vmem [shape: bf16[32,32], index: 3, kind: input, shape index: {}]   ;;  %s2269_s4 = inlined_call_operand.vmem [shape: bf16[32,32], index: 4, kind: input, shape index: {}]   ;;  %s2270_s5 = inlined_call_operand.vmem [shape: bf16[32,32], index: 5, kind: input, shape index: {}]   ;;  %s2271_s6 = inlined_call_operand.vmem [shape: f32[1,32], index: 6, kind: input, shape index: {}]   ;;  %s2272_s7 = inlined_call_operand.vmem [shape: bf16[4,8,32], index: 7, kind: input, shape index: {}]   ;;  %s2273_s8 = inlined_call_operand.vmem [shape: f32[1,32], index: 8, kind: input, shape index: {}]   ;;  %s2274_s9 = inlined_call_operand.vmem [shape: bf16[32,64], index: 9, kind: input, shape index: {}]   ;;  %s2275_s10 = inlined_call_operand.vmem [shape: f32[1,64], index: 10, kind: input, shape index: {}]   ;;  %s2276_s11 = inlined_call_operand.vmem [shape: bf16[64,32], index: 11, kind: input, shape index: {}]   ;;  %s2277_s12 = inlined_call_operand.vmem [shape: f32[1,32], index: 12, kind: input, shape index: {}]   ;;  %s2278_s13 = inlined_call_operand.vmem [shape: f32[1,32], index: 13, kind: input, shape index: {}]   ;;  %s2279_s14 = inlined_call_operand.vmem [shape: f32[1,32], index: 14, kind: input, shape index: {}]   ;;  %s2280_s15 = inlined_call_operand.vmem [shape: f32[1,32], index: 15, kind: input, shape index: {}]   ;;  %s2281_s16 = inlined_call_operand.vmem [shape: f32[1,32], index: 16, kind: input, shape index: {}]   ;;  %s2282_s17 = inlined_call_operand.vmem [shape: f32[2,16,32], index: 17, kind: output, shape index: {}]  }
   0x1   :  { %2288 = sst [smem:[#allocation9_spill]] %s2265_s0  ;;  %s1994_s26 = smov 0  }
   0x2   :  { %2289 = sst [smem:[#allocation10_spill]] %s2266_s1  ;;  %s1996_s27 = smov 0  }
   0x3   :  { %2290 = sst [smem:[#allocation11_spill]] %s2273_s8  ;;  %s1998_s28 = smov 0  }
   0x4   :  { %2291 = sst [smem:[#allocation12_spill]] %s2274_s9 }
   0x5   :  { %2292 = sst [smem:[#allocation13_spill]] %s2275_s10 }
   0x6   :  { %2293 = sst [smem:[#allocation14_spill]] %s2276_s11 }
   0x7   :  { %2294 = sst [smem:[#allocation15_spill]] %s2277_s12 }
   0x8   :  { %2295 = sst [smem:[#allocation16_spill]] %s2278_s13 }
   0x9   :  { %2296 = sst [smem:[#allocation17_spill]] %s2279_s14 }
   0xa   :  { %2297 = sst [smem:[#allocation18_spill]] %s2280_s15 }
   0xb   :  { %2298 = sst [smem:[#allocation19_spill]] %s2281_s16 }
   0xc LB: > { %2299 = sst [smem:[#allocation4_spill]] %s1878_s26  ;;  %s36_s29 = sadd.s32 1, %s1878_s26  ;;  %s1886_s28 = sphi %s1998_s28, %s27_s28   ;;  %s1882_s27 = sphi %s1996_s27, %s2319_s27   ;;  %s1878_s26 = sphi %s1994_s26, %s2318_s26   ;;  %s1874_s25 = sphi %s1992_s25, %s2317_s25   ;;  %s1870_s24 = sphi %s1990_s24, %s2316_s24  }
   0xd   : > { %2300 = sst [smem:[#allocation5_spill]] %s1882_s27  ;;  %s39_s0 = sadd.s32 1, %s1882_s27 }
   0xe   : > { %2301 = sst [smem:[#allocation6_spill]] %s1886_s28  ;;  %p37_p0 = scmp.ge.s32.totalorder %s36_s29, 2 }
   0xf   : > { %p1608_p1 = scmp.ge.s32.totalorder %s1886_s28, 1  ;;  %p519_p2 = scmp.lt.s32.totalorder %s1886_s28, 5 }
  0x10   : > { %s2321_s29 = smov (%p37_p0, %s36_s29), 0  ;;  %s2323_s0 = smov (!%p37_p0, %s39_s0), %s1882_s27 }
  0x11   : > { %2302 = sst [smem:[#allocation7_spill]] %s2321_s29  ;;  %p520_p3 = pnand %p1608_p1, %p519_p2 }
  0x12   : > { %p41_p4 = scmp.ge.s32.totalorder %s2323_s0, 2  ;;  %p584_p5 = scmp.lt.s32.totalorder (!%p520_p3), %s1874_s25, 1 }
  0x13   : > { %523 = sbr.rel (%p520_p3) target bundleno = 2256 (0x8d0), region = 88  ;;  %s2023_s30 = sshll.u32 (!%p520_p3), %s1870_s24, 3 }
  0x14   : > { %s2325_s0 = smov (%p41_p4, %s2323_s0), 0  ;;  %p592_p6 = scmp.lt.s32.totalorder (!%p520_p3), %s2023_s30, 15 }
  0x15   : > { %2303 = sst [smem:[#allocation8_spill]] %s2325_s0  ;;  %p602_p7 = scmp.lt.s32.totalorder (!%p520_p3), %s1870_s24, 1 }
  0x16   : > { %s2304_s22 = sld [smem:[#allocation9_spill]] (!%p520_p3)  ;;  %p1617_p8 = scmp.ne.s32.totalorder (!%p520_p3), %s1870_s24, 0 }
  0x17   : > { %s2305_s16 = sld [smem:[#allocation10_spill]] (!%p520_p3) }
  0x18   : > { %s2327_s25 = smov (!%p584_p5, %s1874_s25), 1 }
  0x19   : > { %s593_s18 = scalar_select %p592_p6, %s2023_s30, 15 }
  0x1a   : > { %s1738_s19 = sshll.u32 %s2327_s25, 4  ;;  %s1613_s1 = sshll.u32 %s2327_s25, 5 }
  0x1b   : > { %s1612_s0 = sshll.u32 %s593_s18, 1  ;;  %s1615_s12 = sshll.u32 %s2327_s25, 1 }
  0x1c   : > { %s2031_s23 = scalar_lea.vmem %s2304_s22, %s1738_s19  ;;  %s596_s29 = sadd.s32 %s1613_s1, %s1612_s0 }
  0x1d   : > { %s1614_s27 = sshll.u32 %s596_s29, 2 }
  0x1e   : > { %s2036_s15 = scalar_lea.vmem %s2305_s16, %s1614_s27 }
  0x1f   : > { %s603_s10 = scalar_select %p602_p7, %s1870_s24, 1 }
  0x20   : > { %612 = sbr.rel (%p1617_p8) target bundleno = 183 (0xb7), region = 92 }
  0x21   : > { %s605_s14 = sadd.s32 %s1615_s12, %s603_s10 }
  0x22   : > { %s1616_s13 = sshll.u32 %s605_s14, 3 }
  0x23   : > { %s2042_s8 = scalar_lea.vmem %s2282_s17, %s1616_s13 }
  0x25   : > { %v1740_v0 = vld [vmem:[%s2269_s4 + $0x8] sm:$0xff]  ;;  %v1739_v2 = vld [vmem:[%s2269_s4] sm:$0xff]  ;;  %vm632_vm0 = vcmask 261120   ;;  %vm686_vm1 = vcmask 257024  }
  0x26   : > { %v1742_v1 = vld [vmem:[%s2268_s3 + $0x8] sm:$0xff]  ;;  %642 = vmatpush.bf16.msra.mxu0 %v1740_v0  ;;  %v1741_v3 = vld [vmem:[%s2268_s3] sm:$0xff] }
  0x27   : > { %676 = vmatpush.bf16.msra.mxu1 %v1742_v1  ;;  %v613_v4 = vld [vmem:[%s2031_s23] sm:$0xff]  ;;  %v614_v5 = vld [vmem:[%s2031_s23 + $0x8] sm:$0xff] }
  0x28   : > { %v615_v6 = vpack.c.bf16 %v614_v5, %v613_v4 }
  0x2a   : > { %643 = vmatpush.bf16.msra.mxu0 %v1739_v2 }
  0x2b   : > { %677 = vmatpush.bf16.msra.mxu1 %v1741_v3 }
  0x2d   : > { %1626 = vmatmul.msk.bf16.vlgmr.msra.gmra.mxu0 %vm632_vm0, %v615_v6 }
  0x2e   : > { %1635 = vmatmul.msk.bf16.vlgmr.msra.gmra.mxu1 %vm632_vm0, %v615_v6 }
  0xaa   : > { %v645_v7 = vpop.f32.mrf.mxu0 }
  0xab   : > { %v679_v8 = vpop.f32.mrf.mxu1  ;;  %v650_v9 = vmul.f32 0.35355338, %v645_v7 }
  0xac   : > { %v684_v10 = vpack.c.bf16 %v679_v8, %v679_v8 }
  0xad   : > { %652 = vst.msk [vmem:[#allocation2] sm:$0xff] %vm632_vm0, %v650_v9 }
  0xae   : > { %687 = vst.msk [vmem:[#allocation3] sm:$0xf] %vm686_vm1, %v684_v10 }
  0xb2   : > { %v647_v11 = vpop.f32.mrf.mxu0 }
  0xb3   : > { %v681_v12 = vpop.f32.mrf.mxu1  ;;  %v651_v13 = vmul.f32 0.35355338, %v647_v11 }
  0xb4   : > { %v685_v14 = vpack.c.bf16 %v681_v12, %v681_v12 }
  0xb5   : > { %653 = vst.msk [vmem:[#allocation2 + $0x8] sm:$0xff] %vm632_vm0, %v651_v13 }
  0xb6   : > { %688 = vst.msk [vmem:[#allocation3 + $0x4] sm:$0xf] %vm686_vm1, %v685_v14 }
  0xb7 PF: > { %v1745_v15 = vld [vmem:[%s2268_s3 + $0x8] sm:$0xff]  ;;  %s690_s27 = scalar_lea.vmem %s2031_s23, %s2023_s30  ;;  %v1744_v17 = vld [vmem:[%s2268_s3] sm:$0xff]  ;;  %vm717_vm2 = vcmask 261120   ;;  %v1748_v22 = vld [vmem:[%s2036_s15 + $0x10] sm:$0xff]  ;;  %s1888_s22 = smov 112   ;;  %vm1055_vm3 = vcmask 1047556  }
  0xb8   : > { %v1755_v16 = vld [vmem:[%s2270_s5 + $0x8] sm:$0xff]  ;;  %727 = vmatpush.bf16.msra.mxu0 %v1745_v15  ;;  %v1754_v18 = vld [vmem:[%s2270_s5] sm:$0xff]  ;;  %v1753_v23 = vld [vmem:[%s2036_s15 + $0x38] sm:$0xff]  ;;  %s1889_s23 = smov 48   ;;  %s1890_s18 = smov 16   ;;  %vm1111_vm4 = vcmask 130048  }
  0xb9   : > { %1762 = vmatpush.bf16.msra.mxu1 %v1755_v16  ;;  %v2073_v19 = vld [vmem:[%s690_s27] sm:$0xff]  ;;  %1763 = vmatpush.bf16.msra.mxu3 %v1755_v16  ;;  %v1747_v21 = vld [vmem:[%s2036_s15 + $0x8] sm:$0xff]  ;;  %v1749_v24 = vld [vmem:[%s2036_s15 + $0x18] sm:$0xff]  ;;  %s1891_s0 = smov 96   ;;  %s1892_s16 = smov 32   ;;  %vm1210_vm5 = vcmask 1043456  }
  0xba   : > { %v692_v20 = vpack.c.bf16 %v2073_v19, %v2073_v19  ;;  %v1746_v25 = vld [vmem:[%s2036_s15] sm:$0xff]  ;;  %v1751_v27 = vld [vmem:[%s2036_s15 + $0x28] sm:$0xff]  ;;  %v1752_v28 = vld [vmem:[%s2036_s15 + $0x30] sm:$0xff]  ;;  %s1893_s26 = smov 80   ;;  %s1894_s10 = smov 64   ;;  %vm1206_vm6 = vcmask 64512  }
  0xbb   : > { %v1750_v26 = vld [vmem:[%s2036_s15 + $0x20] sm:$0xff]  ;;  %s1897_s12 = smov 120   ;;  %s1898_s9 = smov 104   ;;  %vm1450_vm11 = vcmask 523264  }
  0xbc   : > { %728 = vmatpush.bf16.msra.mxu0 %v1744_v17  ;;  %v1818_v29 = vld [vmem:[%s2271_s6] ss:$0 sm:$0xff]  ;;  %v2102_v37 = vld [vmem:[#allocation2 + $0x8] sm:$0xff]  ;;  %s2306_s30 = sld [smem:[#allocation11_spill]] }
  0xbd   : > { %1764 = vmatpush.bf16.msra.mxu1 %v1754_v18  ;;  %1765 = vmatpush.bf16.msra.mxu3 %v1754_v18  ;;  %v2100_v35 = vld [vmem:[#allocation2] sm:$0xff]  ;;  %s2307_s21 = sld [smem:[#allocation12_spill]] }
  0xbe   : > { %s2309_s14 = sld [smem:[#allocation16_spill]] }
  0xbf   : > { %1645 = vmatmul.msk.bf16.vlgmr.msra.gmra.mxu0 %vm717_vm2, %v692_v20  ;;  %s2310_s27 = sld [smem:[#allocation17_spill]] }
  0xc0   : > { %836 = vmatpush.bf16.msrb.mxu0 %v1755_v16  ;;  %1687 = vmatmul.msk.bf16.vlgmr.msra.gmra.mxu1 %vm717_vm2, %v1747_v21 }
  0xc1   : > { %1693 = vmatmul.msk.bf16.vlgmr.msra.gmra.mxu3 %vm717_vm2, %v1753_v23 }
  0xc4   : > { %837 = vmatpush.bf16.msrb.mxu0 %v1754_v18 }
  0xcf   : > { %1686 = vmatmul.msk.bf16.vlgmr.msrb.gmra.mxu0 %vm717_vm2, %v1746_v25 }
  0xd0   : > { %1688 = vmatmul.msk.bf16.gmra.mxu1 %vm717_vm2, %v1748_v22 }
  0xe0   : > { %1689 = vmatmul.msk.bf16.gmra.mxu1 %vm717_vm2, %v1749_v24 }
  0xf0   : > { %1690 = vmatmul.msk.bf16.gmra.mxu1 %vm717_vm2, %v1750_v26 }
 0x100   : > { %1691 = vmatmul.msk.bf16.gmra.mxu1 %vm717_vm2, %v1751_v27 }
 0x110   : > { %1692 = vmatmul.msk.bf16.gmra.mxu1 %vm717_vm2, %v1752_v28 }
 0x13c   : > { %v730_v30 = vpop.f32.mrf.mxu0 }
 0x13d   : > { %v844_v31 = vpop.f32.mrf.mxu1  ;;  %v2097_v32 = vadd.f32 %v1818_v29, %v730_v30 }
 0x13f   : > { %v880_v33 = vrot.slane %v2097_v32, 1  ;;  %v881_v42 = vrot.slane %v2097_v32, 2  ;;  %v882_v55 = vrot.slane %v2097_v32, 3  ;;  %v886_v2 = vrot.slane %v2097_v32, 7 }
 0x140   : > { %v885_v29 = vrot.slane %v2097_v32, 6 }
 0x141   : > { %v888_v34 = vperm.slane %v880_v33, 0  ;;  %v889_v46 = vperm.slane %v881_v42, 0  ;;  %v890_v59 = vperm.slane %v882_v55, 0  ;;  %v894_v4 = vperm.slane %v886_v2, 0 }
 0x142   : > { %v893_v30 = vperm.slane %v885_v29, 0  ;;  %v884_v33 = vrot.slane %v2097_v32, 5 }
 0x143   : > { %v905_v36 = vadd.f32 %v888_v34, %v844_v31 }
 0x144   : > { %v732_v39 = vpop.f32.mrf.mxu0  ;;  %v874_v63 = vpop.f32.mrf.mxu3 }
 0x145   : > { %v846_v38 = vpop.f32.mrf.mxu1  ;;  %v921_v40 = vmul.f32 %v905_v36, %v2100_v35  ;;  %v917_v8 = vadd.f32 %v894_v4, %v874_v63  ;;  %v892_v36 = vperm.slane %v884_v33, 0 }
 0x146   : > { %v906_v41 = vadd.f32 %v888_v34, %v846_v38 }
 0x147   : > { %v937_v43 = vpack.c.bf16 %v921_v40, %v921_v40  ;;  %v933_v12 = vmul.f32 %v917_v8, %v2100_v35 }
 0x148   : > { %v922_v44 = vmul.f32 %v906_v41, %v2102_v37  ;;  %v883_v41 = vrot.slane %v2097_v32, 4 }
 0x149   : > { %v2107_v47 = vunpack.c.l.b16 %v937_v43  ;;  %v949_v15 = vpack.c.bf16 %v933_v12, %v933_v12 }
 0x14a   : > { %v938_v45 = vpack.c.bf16 %v922_v44, %v922_v44 }
 0x14b   : > { %v982_v20 = vunpack.c.l.b16 %v949_v15 }
 0x14c   : > { %v2109_v48 = vunpack.c.l.b16 %v938_v45  ;;  %v876_v6 = vpop.f32.mrf.mxu3 }
 0x14d   : > { %v849_v49 = vpop.f32.mrf.mxu1  ;;  %v918_v9 = vadd.f32 %v894_v4, %v876_v6 }
 0x14e   : > { %v907_v50 = vadd.f32 %v889_v46, %v849_v49  ;;  %v985_v51 = vpack.c.b16 %v2109_v48, %v2107_v47  ;;  %v891_v49 = vperm.slane %v883_v41, 0 }
 0x14f   : > { %v934_v13 = vmul.f32 %v918_v9, %v2102_v37 }
 0x150   : > { %v923_v52 = vmul.f32 %v907_v50, %v2100_v35 }
 0x151   : > { %v950_v16 = vpack.c.bf16 %v934_v13, %v934_v13  ;;  %v887_v13 = vperm.slane %v2097_v32, 0 }
 0x152   : > { %v939_v56 = vpack.c.bf16 %v923_v52, %v923_v52 }
 0x153   : > { %v983_v21 = vunpack.c.l.b16 %v950_v16 }
 0x154   : > { %v2116_v60 = vunpack.c.l.b16 %v939_v56 }
 0x155   : > { %v851_v53 = vpop.f32.mrf.mxu1  ;;  %v991_v23 = vpack.c.b16 %v983_v21, %v982_v20 }
 0x156   : > { %v908_v54 = vadd.f32 %v889_v46, %v851_v53 }
 0x157   : > { %v1017_v25 = vsel %vm717_vm2, %v991_v23, 0 }
 0x158   : > { %v924_v57 = vmul.f32 %v908_v54, %v2102_v37  ;;  %1019 = vmatpush.bf16.xpose.msra.mxu2 %v1017_v25 }
 0x15a   : > { %v940_v58 = vpack.c.bf16 %v924_v57, %v924_v57 }
 0x15c   : > { %v2118_v61 = vunpack.c.l.b16 %v940_v58 }
 0x15d   : > { %v854_v62 = vpop.f32.mrf.mxu1 }
 0x15e   : > { %v909_v0 = vadd.f32 %v890_v59, %v854_v62  ;;  %v986_v1 = vpack.c.b16 %v2118_v61, %v2116_v60  ;;  %v1895_v61 = vmov 1983009808  }
 0x160   : > { %v925_v3 = vmul.f32 %v909_v0, %v2100_v35  ;;  %v1002_v21 = vsel %vm717_vm2, %v986_v1, 0  ;;  %v1058_v1 = vunpack.c.l.s4 %v1895_v61 }
 0x162   : > { %v941_v10 = vpack.c.bf16 %v925_v3, %v925_v3 }
 0x164   : > { %v974_v17 = vunpack.c.l.b16 %v941_v10 }
 0x165   : > { %v856_v5 = vpop.f32.mrf.mxu1 }
 0x166   : > { %v910_v7 = vadd.f32 %v890_v59, %v856_v5 }
 0x168   : > { %v926_v11 = vmul.f32 %v910_v7, %v2102_v37 }
 0x16a   : > { %v942_v14 = vpack.c.bf16 %v926_v11, %v926_v11  ;;  %v839_v11 = vpop.f32.mrf.mxu0 }
 0x16b   : > { %v903_v16 = vadd.f32 %v887_v13, %v839_v11 }
 0x16c   : > { %v975_v18 = vunpack.c.l.b16 %v942_v14 }
 0x16d   : > { %v859_v22 = vpop.f32.mrf.mxu1 }
 0x16e   : > { %v987_v24 = vpack.c.b16 %v975_v18, %v974_v17  ;;  %v911_v57 = vadd.f32 %v891_v49, %v859_v22  ;;  %v919_v18 = vmul.f32 %v903_v16, %v2100_v35 }
 0x170   : > { %v927_v2 = vmul.f32 %v911_v57, %v2100_v35  ;;  %v1005_v14 = vsel %vm717_vm2, %v987_v24, 0  ;;  %v935_v22 = vpack.c.bf16 %v919_v18, %v919_v18  ;;  %v999_v24 = vsel %vm717_vm2, %v985_v51, 0 }
 0x172   : > { %v943_v6 = vpack.c.bf16 %v927_v2, %v927_v2  ;;  %v841_v15 = vpop.f32.mrf.mxu0  ;;  %v968_v25 = vunpack.c.l.b16 %v935_v22 }
 0x173   : > { %v904_v17 = vadd.f32 %v887_v13, %v841_v15  ;;  %v1743_v15 = vld [vmem:[#allocation3] sm:$0xff] }
 0x174   : > { %v976_v9 = vunpack.c.l.b16 %v943_v6  ;;  %1176 = vmatpush.bf16.msrb.mxu3 %v1743_v15 }
 0x175   : > { %v861_v26 = vpop.f32.mrf.mxu1  ;;  %v920_v20 = vmul.f32 %v904_v17, %v2102_v37 }
 0x176   : > { %v912_v53 = vadd.f32 %v891_v49, %v861_v26 }
 0x177   : > { %v936_v23 = vpack.c.bf16 %v920_v20, %v920_v20 }
 0x178   : > { %v928_v62 = vmul.f32 %v912_v53, %v2102_v37 }
 0x179   : > { %v969_v32 = vunpack.c.l.b16 %v936_v23 }
 0x17a   : > { %v944_v4 = vpack.c.bf16 %v928_v62, %v928_v62 }
 0x17b   : > { %v984_v26 = vpack.c.b16 %v969_v32, %v968_v25 }
 0x17c   : > { %v977_v7 = vunpack.c.l.b16 %v944_v4 }
 0x17d   : > { %v864_v27 = vpop.f32.mrf.mxu1 }
 0x17e   : > { %v913_v42 = vadd.f32 %v892_v36, %v864_v27  ;;  %v988_v10 = vpack.c.b16 %v977_v7, %v976_v9 }
 0x180   : > { %v929_v50 = vmul.f32 %v913_v42, %v2100_v35  ;;  %v1008_v12 = vsel %vm717_vm2, %v988_v10, 0 }
 0x182   : > { %v945_v58 = vpack.c.bf16 %v929_v50, %v929_v50 }
 0x184   : > { %v978_v3 = vunpack.c.l.b16 %v945_v58 }
 0x185   : > { %v866_v28 = vpop.f32.mrf.mxu1 }
 0x186   : > { %v914_v38 = vadd.f32 %v892_v36, %v866_v28 }
 0x188   : > { %v930_v44 = vmul.f32 %v914_v38, %v2102_v37 }
 0x18a   : > { %v946_v54 = vpack.c.bf16 %v930_v44, %v930_v44 }
 0x18c   : > { %v979_v63 = vunpack.c.l.b16 %v946_v54 }
 0x18d   : > { %v869_v31 = vpop.f32.mrf.mxu1 }
 0x18e   : > { %v915_v34 = vadd.f32 %v893_v30, %v869_v31  ;;  %v989_v5 = vpack.c.b16 %v979_v63, %v978_v3 }
 0x190   : > { %v931_v39 = vmul.f32 %v915_v34, %v2100_v35  ;;  %v1011_v8 = vsel %vm717_vm2, %v989_v5, 0  ;;  %v996_v35 = vsel %vm717_vm2, %v984_v26, 0  ;;  %v1896_v34 = vmov 1934713408  }
 0x191   : > { %v1084_v36 = vunpack.c.l.s4 %v1896_v34 }
 0x192   : > { %v947_v45 = vpack.c.bf16 %v931_v39, %v931_v39 }
 0x194   : > { %v980_v55 = vunpack.c.l.b16 %v947_v45 }
 0x195   : > { %v871_v40 = vpop.f32.mrf.mxu1 }
 0x196   : > { %v916_v43 = vadd.f32 %v893_v30, %v871_v40  ;;  %v1059_v30 = vunpack.c.0.s8 %v1058_v1 }
 0x198   : > { %v932_v46 = vmul.f32 %v916_v43, %v2102_v37  ;;  %v951_v37 = vld [vmem:[%s2267_s2] sm:$0x3]  ;;  %v1085_v43 = vunpack.c.0.s8 %v1084_v36 }
 0x19a   : > { %v948_v52 = vpack.c.bf16 %v932_v46, %v932_v46 }
 0x19c   : > { %v981_v56 = vunpack.c.l.b16 %v948_v52 }
 0x19e   : > { %v990_v59 = vpack.c.b16 %v981_v56, %v980_v55 }
 0x1a0   : > { %v1014_v0 = vsel %vm717_vm2, %v990_v59, 0 }
 0x1a1   : > { %1020 = vmatpush.bf16.xpose.msra.mxu2 %v1014_v0 }
 0x1a9   : > { %1021 = vmatpush.bf16.xpose.msra.mxu2 %v1011_v8 }
 0x1b1   : > { %1022 = vmatpush.bf16.xpose.msra.mxu2 %v1008_v12 }
 0x1b9   : > { %1023 = vmatpush.bf16.xpose.msra.mxu2 %v1005_v14 }
 0x1c1   : > { %1024 = vmatpush.bf16.xpose.msra.mxu2 %v1002_v21 }
 0x1c9   : > { %1025 = vmatpush.bf16.xpose.msra.mxu2 %v999_v24 }
 0x1d1   : > { %1026 = vmatpush.bf16.xpose.msra.mxu2 %v996_v35 }
 0x1d8   : > { %1694 = vmatmul.msk.bf16.vlgmr.msra.gmra.mxu2 %vm717_vm2, %v951_v37 }
 0x25b   : > { %v1028_v60 = vpop.f32.mrf.mxu2 }
 0x25c   : > { %1033 = vrot.lane.b32.xlu2 %v1028_v60, %s1888_s22  ;;  %1045 = vrot.lane.b32.xlu1 %v1028_v60, %s1889_s23 }
 0x25d   : > { %1051 = vrot.lane.b32.xlu0 %v1028_v60, %s1890_s18 }
 0x263   : > { %v1030_v47 = vpop.f32.mrf.mxu2 }
 0x264   : > { %1036 = vrot.lane.b32.xlu2 %v1028_v60, %s1891_s0  ;;  %1048 = vrot.lane.b32.xlu1 %v1028_v60, %s1892_s16  ;;  %s2308_s16 = sld [smem:[#allocation14_spill]] }
 0x265   : > { %1039 = vrot.lane.b32.xlu0 %v1028_v60, %s1893_s26  ;;  %s2313_s0 = sld [smem:[#allocation18_spill]] }
 0x26d   : > { %1042 = vrot.lane.b32.xlu0 %v1028_v60, %s1894_s10 }
 0x2b6   : > { %v1034_v48 = vpop.permute.xlu2 %1033 }
 0x2be   : > { %v1037_v51 = vpop.permute.xlu2 %1036 }
 0x2bf   : > { %v1054_v28 = vrot.slane %v1037_v51, 4 }
 0x2c1   : > { %v1056_v31 = vsel %vm1055_vm3, %v1054_v28, %v1028_v60 }
 0x2c2   : > { %v1060_v38 = vperm.slane %v1056_v31, %v1059_v30 }
 0x2c4   : > { %v1081_v44 = vrot.slane %v1060_v38, 4 }
 0x2ce   : > { %v1046_v29 = vpop.permute.xlu1 %1045 }
 0x2cf   : > { %v1052_v27 = vpop.permute.xlu0 %1051 }
 0x2d0   : > { %v1073_v33 = vrot.slane %v1052_v27, 4 }
 0x2d2   : > { %v1074_v41 = vsel %vm1055_vm3, %v1073_v33, %v1046_v29 }
 0x2d3   : > { %v1078_v49 = vperm.slane %v1074_v41, %v1059_v30 }
 0x2d5   : > { %v1091_v59 = vrot.slane %v1078_v49, 4 }
 0x2d6   : > { %v1049_v45 = vpop.permute.xlu1 %1048 }
 0x2d7   : > { %v1040_v39 = vpop.permute.xlu0 %1039  ;;  %v1067_v53 = vrot.slane %v1049_v45, 4 }
 0x2d8   : > { %v1061_v40 = vrot.slane %v1040_v39, 4 }
 0x2da   : > { %v1062_v42 = vsel %vm1055_vm3, %v1061_v40, %v1034_v48 }
 0x2db   : > { %v1066_v46 = vperm.slane %v1062_v42, %v1059_v30  ;;  %v1183_v42 = vld [vmem:[%s2272_s7] sm:$0xf] }
 0x2dd   : > { %v1079_v50 = vrot.slane %v1066_v46, 4  ;;  %v1082_v52 = vsel %vm1055_vm3, %v1066_v46, %v1081_v44  ;;  %v1701_v44 = vld [vmem:[%s2272_s7 + $0x4] sm:$0xf] }
 0x2de   : > { %v1090_v54 = vperm.slane %v1082_v52, %v1085_v43  ;;  %v1212_v45 = vsel %vm1210_vm5, %v1701_v44, 0 }
 0x2df   : > { %v1043_v55 = vpop.permute.xlu0 %1042  ;;  %v1080_v56 = vsel %vm1055_vm3, %v1079_v50, %v1060_v38  ;;  %1221 = vmatpush.bf16.msra.mxu0 %v1212_v45 }
 0x2e0   : > { %v1068_v57 = vsel %vm1055_vm3, %v1067_v53, %v1043_v55  ;;  %v1086_v58 = vperm.slane %v1080_v56, %v1085_v43  ;;  %v1109_v8 = vrot.slane %v1090_v54, 4 }
 0x2e1   : > { %v1072_v62 = vperm.slane %v1068_v57, %v1059_v30 }
 0x2e2   : > { %v1105_v3 = vrot.slane %v1086_v58, 4 }
 0x2e3   : > { %v1093_v63 = vrot.slane %v1072_v62, 4  ;;  %v1092_v0 = vsel %vm1055_vm3, %v1091_v59, %v1072_v62 }
 0x2e4   : > { %v1098_v2 = vperm.slane %v1092_v0, %v1085_v43 }
 0x2e5   : > { %v1094_v4 = vsel %vm1055_vm3, %v1078_v49, %v1093_v63 }
 0x2e6   : > { %v1106_v5 = vsel %vm1055_vm3, %v1098_v2, %v1105_v3  ;;  %v1103_v6 = vrot.slane %v1098_v2, 4  ;;  %v1102_v7 = vperm.slane %v1094_v4, %v1085_v43  ;;  %v1231_v43 = vsel %vm1210_vm5, %v1183_v42, 0  ;;  %v1705_v4 = vld [vmem:[%s2272_s7 + $0x8] sm:$0xf] }
 0x2e7   : > { %v1115_v9 = vsel %vm1111_vm4, %v1106_v5, -inf  ;;  %v1759_v42 = vld [vmem:[%s2308_s16 + $0x8] sm:$0xff] }
 0x2e8   : > { %1116 = vmax.xlane.f32.xlu2 %v1115_v9  ;;  %v1104_v10 = vsel %vm1055_vm3, %v1103_v6, %v1086_v58  ;;  %v1107_v11 = vrot.slane %v1102_v7, 4  ;;  %v1110_v12 = vsel %vm1055_vm3, %v1102_v7, %v1109_v8  ;;  %v1708_v6 = vld [vmem:[%s2272_s7 + $0xc] sm:$0xf] }
 0x2e9   : > { %v1112_v13 = vsel %vm1111_vm4, %v1104_v10, -inf  ;;  %v1121_v35 = vsel %vm1111_vm4, %v1110_v12, -inf  ;;  %v1314_v7 = vsel %vm1210_vm5, %v1708_v6, 0 }
 0x2ea   : > { %1113 = vmax.xlane.f32.xlu1 %v1112_v13  ;;  %v1108_v14 = vsel %vm1055_vm3, %v1107_v11, %v1090_v54 }
 0x2eb   : > { %v1118_v26 = vsel %vm1111_vm4, %v1108_v14, -inf }
 0x303   : > { %1184 = vrot.lane.b32.xlu1 %v1743_v15, %s1897_s12  ;;  %s2314_s12 = sld [smem:[#allocation19_spill]] }
 0x30b   : > { %1288 = vrot.lane.b32.xlu1 %v1743_v15, %s1898_s9 }
 0x35b   : > { %v1117_v16 = vpop.xlane.xlu2 %1116 }
 0x35c   : > { %v1125_v17 = vsub.f32 %v1106_v5, %v1117_v16  ;;  %v1272_v5 = vsel %vm1210_vm5, %v1705_v4, 0 }
 0x35d   : > { %v1114_v18 = vpop.xlane.xlu1 %1113 }
 0x35e   : > { %v1130_v20 = vmul.f32 1.442695, %v1125_v17  ;;  %v1124_v21 = vsub.f32 %v1104_v10, %v1114_v18 }
 0x360   : > { %1826 = vpow2.f32 %v1130_v20  ;;  %v1128_v22 = vmul.f32 1.442695, %v1124_v21 }
 0x362   : > { %1828 = vpow2.f32 %v1128_v22 }
 0x366   : > { %v1827_v23 = vpop.eup %1826 }
 0x367   : > { %v1139_v25 = vsel %vm1111_vm4, %v1827_v23, 0.0 }
 0x368   : > { %v1829_v32 = vpop.eup %1828  ;;  %1140 = vadd.xlane.f32.xlu2 %v1139_v25 }
 0x369   : > { %v1136_v24 = vsel %vm1111_vm4, %v1829_v32, 0.0 }
 0x36a   : > { %1137 = vadd.xlane.f32.xlu0 %v1136_v24 }
 0x370   : > { %1119 = vmax.xlane.f32.xlu2 %v1118_v26 }
 0x372   : > { %1122 = vmax.xlane.f32.xlu0 %v1121_v35 }
 0x375   : > { %v1185_v37 = vpop.permute.xlu1 %1184 }
 0x376   : > { %1197 = vmatpush.bf16.msra.mxu3 %v1185_v37 }
 0x37d   : > { %v1289_v56 = vpop.permute.xlu1 %1288 }
 0x386   : > { %1246 = vrot.lane.b32.xlu0 %v1743_v15, %s1888_s22  ;;  %s2312_s22 = sld [smem:[#allocation15_spill]] }
 0x3db   : > { %v1141_v60 = vpop.xlane.xlu2 %1140 }
 0x3dd   : > { %v1138_v47 = vpop.xlane.xlu0 %1137 }
 0x3de   : > { %1830 = vrcp.f32 %v1138_v47 }
 0x3e3   : > { %v1120_v48 = vpop.xlane.xlu2 %1119 }
 0x3e4   : > { %v1831_v51 = vpop.eup %1830  ;;  %v1126_v61 = vsub.f32 %v1108_v14, %v1120_v48 }
 0x3e5   : > { %v1152_v1 = vmul.f32 %v1831_v51, %v1829_v32  ;;  %v1123_v27 = vpop.xlane.xlu0 %1122 }
 0x3e6   : > { %v1132_v28 = vmul.f32 1.442695, %v1126_v61  ;;  %v1127_v29 = vsub.f32 %v1110_v12, %v1123_v27 }
 0x3e7   : > { %v1156_v30 = vpack.c.bf16 %v1152_v1, %v1152_v1 }
 0x3e8   : > { %1832 = vpow2.f32 %v1132_v28  ;;  %v1134_v31 = vmul.f32 1.442695, %v1127_v29 }
 0x3e9   : > { %1699 = vmatmul.msk.bf16.vlgmr.msrb.gmra.mxu3 %vm1111_vm4, %v1156_v30  ;;  %1834 = vrcp.f32 %v1141_v60  ;;  %v1899_v60 = vmov 32.0  }
 0x3ea   : > { %1836 = vpow2.f32 %v1134_v31  ;;  %1240 = vmatpush.bf16.msrb.mxu3 %v1231_v43 }
 0x3ee   : > { %v1833_v33 = vpop.eup %1832 }
 0x3ef   : > { %v1142_v34 = vsel %vm1111_vm4, %v1833_v33, 0.0  ;;  %v1835_v36 = vpop.eup %1834 }
 0x3f0   : > { %1143 = vadd.xlane.f32.xlu2 %v1142_v34  ;;  %v1153_v38 = vmul.f32 %v1835_v36, %v1827_v23  ;;  %v1837_v39 = vpop.eup %1836  ;;  %v1819_v23 = vld [vmem:[%s2306_s30] ss:$0 sm:$0xff]  ;;  %v1761_v36 = vld [vmem:[%s2308_s16 + $0x18] sm:$0xff]  ;;  %s2311_s30 = sld [smem:[#allocation13_spill]] }
 0x3f1   : > { %v1145_v41 = vsel %vm1111_vm4, %v1837_v39, 0.0  ;;  %v1756_v34 = vld [vmem:[%s2307_s21] sm:$0xff]  ;;  %1458 = vmatpush.bf16.msrb.mxu2 %v1761_v36 }
 0x3f2   : > { %v1157_v40 = vpack.c.bf16 %v1153_v38, %v1153_v38 }
 0x3f8   : > { %1146 = vadd.xlane.f32.xlu2 %v1145_v41  ;;  %v1247_v46 = vpop.permute.xlu0 %1246 }
 0x3f9   : > { %1700 = vmatmul.msk.bf16.vlgmr.msra.gmra.mxu3 %vm1111_vm4, %v1157_v40  ;;  %1259 = vmatpush.bf16.msrb.mxu0 %v1247_v46  ;;  %v1760_v40 = vld [vmem:[%s2308_s16 + $0x10] sm:$0xff] }
 0x3fa   : > { %1281 = vmatpush.bf16.msra.mxu3 %v1272_v5  ;;  %1459 = vmatpush.bf16.msrb.mxu2 %v1760_v40  ;;  %v1823_v5 = vld [vmem:[%s2312_s22] ss:$0 sm:$0xff] }
 0x3fe   : > { %1460 = vmatpush.bf16.msrb.mxu2 %v1759_v42 }
 0x463   : > { %v1144_v54 = vpop.xlane.xlu2 %1143 }
 0x464   : > { %1838 = vrcp.f32 %v1144_v54  ;;  %v1821_v54 = vld [vmem:[%s2310_s27] ss:$0 sm:$0xff] }
 0x46a   : > { %v1839_v58 = vpop.eup %1838 }
 0x46b   : > { %v1154_v59 = vmul.f32 %v1839_v58, %v1833_v33  ;;  %v1147_v63 = vpop.xlane.xlu2 %1146 }
 0x46c   : > { %v1178_v49 = vpop.f32.mrf.mxu3  ;;  %1840 = vrcp.f32 %v1147_v63 }
 0x46d   : > { %v1182_v50 = vpack.c.bf16 %v1178_v49, %v1178_v49  ;;  %v1158_v62 = vpack.c.bf16 %v1154_v59, %v1154_v59  ;;  %1842 = vrcp.f32 %v1899_v60  ;;  %v1758_v59 = vld [vmem:[%s2308_s16] sm:$0xff] }
 0x46e   : > { %1461 = vmatpush.bf16.msrb.mxu2 %v1758_v59 }
 0x46f   : > { %1703 = vmatmul.msk.bf16.vlgmr.msrb.gmra.mxu3 %vm1206_vm6, %v1182_v50 }
 0x470   : > { %1323 = vmatpush.bf16.msrb.mxu3 %v1314_v7 }
 0x472   : > { %v1841_v0 = vpop.eup %1840 }
 0x473   : > { %v1155_v2 = vmul.f32 %v1841_v0, %v1837_v39  ;;  %v1843_v47 = vpop.eup %1842 }
 0x474   : > { %v1180_v52 = vpop.f32.mrf.mxu3  ;;  %v1340_v48 = vmul.f32 32.0, %v1843_v47  ;;  %vm1344_vm7 = vweird.f32 %v1843_v47 }
 0x475   : > { %v1159_v3 = vpack.c.bf16 %v1155_v2, %v1155_v2  ;;  %v1820_v52 = vld [vmem:[%s2309_s14] ss:$0 sm:$0xff] }
 0x476   : > { %v1341_v51 = vsub.f32 1.0, %v1340_v48 }
 0x478   : > { %v1342_v61 = vmul.f32 %v1843_v47, %v1341_v51 }
 0x47a   : > { %v1343_v1 = vadd.f32 %v1843_v47, %v1342_v61 }
 0x47c   : > { %v1199_v53 = vpop.f32.mrf.mxu3  ;;  %v1345_v27 = vsel %vm1344_vm7, %v1843_v47, %v1343_v1 }
 0x47d   : > { %v1203_v55 = vpack.c.bf16 %v1199_v53, %v1199_v53 }
 0x47f   : > { %1702 = vmatmul.msk.bf16.vlgmr.msra.gmra.mxu0 %vm1206_vm6, %v1203_v55 }
 0x480   : > { %1301 = vmatpush.bf16.msra.mxu0 %v1289_v56 }
 0x484   : > { %v1201_v57 = vpop.f32.mrf.mxu3 }
 0x48f   : > { %1704 = vmatmul.msk.bf16.vlgmr.msrb.gmra.mxu0 %vm1111_vm4, %v1158_v62  ;;  %v1822_v62 = vld [vmem:[%s2311_s30] ss:$0 sm:$0xff] }
 0x49f   : > { %1707 = vmatmul.msk.bf16.vlgmr.msra.gmra.mxu0 %vm1111_vm4, %v1159_v3 }
 0x4f2   : > { %v1242_v8 = vpop.f32.mrf.mxu3 }
 0x4fa   : > { %v1244_v9 = vpop.f32.mrf.mxu3 }
 0x4fc   : > { %v1223_v10 = vpop.f32.mrf.mxu0 }
 0x4fd   : > { %v1243_v11 = vadd.f32 %v1242_v8, %v1223_v10 }
 0x504   : > { %v1225_v12 = vpop.f32.mrf.mxu0 }
 0x50c   : > { %v1261_v13 = vpop.f32.mrf.mxu0 }
 0x50d   : > { %v1265_v14 = vpack.c.bf16 %v1261_v13, %v1261_v13 }
 0x50f   : > { %1706 = vmatmul.msk.bf16.vlgmr.msra.gmra.mxu3 %vm1206_vm6, %v1265_v14 }
 0x514   : > { %v1263_v15 = vpop.f32.mrf.mxu0 }
 0x51c   : > { %v1303_v16 = vpop.f32.mrf.mxu0 }
 0x51d   : > { %v1307_v17 = vpack.c.bf16 %v1303_v16, %v1303_v16 }
 0x51f   : > { %1709 = vmatmul.msk.bf16.vlgmr.msrb.gmra.mxu3 %vm1206_vm6, %v1307_v17 }
 0x524   : > { %v1305_v18 = vpop.f32.mrf.mxu0 }
 0x592   : > { %v1283_v20 = vpop.f32.mrf.mxu3 }
 0x593   : > { %v1287_v22 = vadd.f32 %v1283_v20, %v1243_v11 }
 0x59a   : > { %v1285_v21 = vpop.f32.mrf.mxu3 }
 0x5a2   : > { %v1325_v25 = vpop.f32.mrf.mxu3 }
 0x5a3   : > { %v1329_v32 = vadd.f32 %v1325_v25, %v1287_v22 }
 0x5a5   : > { %v1334_v24 = vadd.f32 %v1819_v23, %v1329_v32 }
 0x5a7   : > { %v1335_v26 = vadd.f32 %v1334_v24, %v2073_v19  ;;  %v1757_v19 = vld [vmem:[%s2307_s21 + $0x8] sm:$0xff]  ;;  %v1824_v24 = vld [vmem:[%s2313_s0] ss:$0 sm:$0xff] }
 0x5a8   : > { %1405 = vmatpush.bf16.msrb.mxu0 %v1757_v19 }
 0x5a9   : > { %v1336_v35 = vsel %vm717_vm2, %v1335_v26, 0.0 }
 0x5aa   : > { %1337 = vadd.xlane.f32.xlu2 %v1336_v35  ;;  %v1327_v37 = vpop.f32.mrf.mxu3  ;;  %v1825_v35 = vld [vmem:[%s2314_s12] ss:$0 sm:$0xff] }
 0x5ac   : > { %1406 = vmatpush.bf16.msrb.mxu0 %v1756_v34 }
 0x61d   : > { %v1338_v28 = vpop.xlane.xlu2 %1337 }
 0x61e   : > { %v1346_v29 = vmul.f32 %v1345_v27, %v1338_v28 }
 0x620   : > { %v1347_v30 = vsub.f32 %v1335_v26, %v1346_v29 }
 0x622   : > { %v1348_v31 = vmul.f32 %v1347_v30, %v1347_v30 }
 0x624   : > { %v1349_v33 = vsel %vm717_vm2, %v1348_v31, 0.0 }
 0x625   : > { %1350 = vadd.xlane.f32.xlu1 %v1349_v33 }
 0x698   : > { %v1351_v38 = vpop.xlane.xlu1 %1350 }
 0x699   : > { %v1352_v39 = vmul.f32 %v1351_v38, %v1345_v27 }
 0x69b   : > { %v1353_v41 = vadd.f32 1e-05, %v1352_v39 }
 0x69d   : > { %1844 = vrsqrt.f32 %v1353_v41  ;;  %vm1360_vm9 = vweird.f32 %v1353_v41 }
 0x6a3   : > { %v1845_v43 = vpop.eup %1844 }
 0x6a4   : > { %v1355_v44 = vmul.f32 %v1845_v43, %v1353_v41  ;;  %vm1361_vm8 = vweird.f32 %v1845_v43 }
 0x6a5   : > { %vm1362_vm10 = vmor %vm1360_vm9, %vm1361_vm8 }
 0x6a6   : > { %v1356_v45 = vmul.f32 %v1845_v43, %v1355_v44 }
 0x6a8   : > { %v1357_v46 = vmul.f32 0.5, %v1356_v45 }
 0x6aa   : > { %v1358_v49 = vsub.f32 1.5, %v1357_v46 }
 0x6ac   : > { %v1359_v50 = vmul.f32 %v1845_v43, %v1358_v49 }
 0x6ae   : > { %v1363_v53 = vsel %vm1362_vm10, %v1845_v43, %v1359_v50 }
 0x6af   : > { %v1364_v55 = vmul.f32 %v1363_v53, %v1347_v30 }
 0x6b1   : > { %v1369_v56 = vmul.f32 %v1820_v52, %v1364_v55 }
 0x6b3   : > { %v1374_v57 = vadd.f32 %v1821_v54, %v1369_v56 }
 0x6b5   : > { %v1375_v58 = vpack.c.bf16 %v1374_v57, %v1374_v57 }
 0x6b7   : > { %1718 = vmatmul.msk.bf16.vlgmr.msrb.gmra.mxu0 %vm717_vm2, %v1375_v58 }
 0x734   : > { %v1408_v63 = vpop.f32.mrf.mxu0 }
 0x735   : > { %v1409_v0 = vadd.f32 %v1822_v62, %v1408_v63 }
 0x737   : > { %v1412_v2 = vmax.f32 %v1409_v0, 0.0 }
 0x739   : > { %v1413_v3 = vpack.c.bf16 %v1412_v2, %v1412_v2 }
 0x73b   : > { %1735 = vmatmul.msk.bf16.vlgmr.msrb.gmra.mxu2 %vm1450_vm11, %v1413_v3 }
 0x73c   : > { %v1410_v4 = vpop.f32.mrf.mxu0 }
 0x7be   : > { %v1463_v6 = vpop.f32.mrf.mxu2 }
 0x7bf   : > { %v1464_v7 = vadd.f32 %v1823_v5, %v1463_v6 }
 0x7c1   : > { %v1467_v8 = vadd.f32 %v1464_v7, %v1374_v57 }
 0x7c3   : > { %v1468_v9 = vsel %vm717_vm2, %v1467_v8, 0.0 }
 0x7c4   : > { %1469 = vadd.xlane.f32.xlu0 %v1468_v9 }
 0x7c6   : > { %v1465_v10 = vpop.f32.mrf.mxu2 }
 0x837   : > { %v1470_v11 = vpop.xlane.xlu0 %1469 }
 0x838   : > { %v1471_v12 = vmul.f32 %v1470_v11, %v1345_v27 }
 0x83a   : > { %v1472_v13 = vsub.f32 %v1467_v8, %v1471_v12 }
 0x83c   : > { %v1473_v14 = vmul.f32 %v1472_v13, %v1472_v13 }
 0x83e   : > { %v1474_v15 = vsel %vm717_vm2, %v1473_v14, 0.0 }
 0x83f   : > { %1475 = vadd.xlane.f32.xlu2 %v1474_v15 }
 0x8b2   : > { %v1476_v16 = vpop.xlane.xlu2 %1475 }
 0x8b3   : > { %v1477_v17 = vmul.f32 %v1476_v16, %v1345_v27 }
 0x8b5   : > { %v1478_v18 = vadd.f32 1e-05, %v1477_v17 }
 0x8b7   : > { %1846 = vrsqrt.f32 %v1478_v18  ;;  %vm1485_vm13 = vweird.f32 %v1478_v18 }
 0x8bd   : > { %v1847_v20 = vpop.eup %1846 }
 0x8be   : > { %v1480_v21 = vmul.f32 %v1847_v20, %v1478_v18  ;;  %vm1486_vm12 = vweird.f32 %v1847_v20 }
 0x8bf   : > { %vm1487_vm14 = vmor %vm1485_vm13, %vm1486_vm12 }
 0x8c0   : > { %v1481_v22 = vmul.f32 %v1847_v20, %v1480_v21 }
 0x8c2   : > { %v1482_v23 = vmul.f32 0.5, %v1481_v22 }
 0x8c4   : > { %v1483_v25 = vsub.f32 1.5, %v1482_v23 }
 0x8c6   : > { %v1484_v32 = vmul.f32 %v1847_v20, %v1483_v25 }
 0x8c8   : > { %v1488_v26 = vsel %vm1487_vm14, %v1847_v20, %v1484_v32 }
 0x8c9   : > { %v1489_v37 = vmul.f32 %v1488_v26, %v1472_v13 }
 0x8cb   : > { %v1494_v60 = vmul.f32 %v1824_v24, %v1489_v37 }
 0x8cd   : > { %v1499_v47 = vadd.f32 %v1825_v35, %v1494_v60 }
 0x8cf   : > { %1500 = vst.msk [vmem:[%s2042_s8] sm:$0xff] %vm717_vm2, %v1499_v47 }
 0x8d0 PF: > { %s2315_s9 = sld [smem:[#allocation6_spill]] }
 0x8d1   : > { %s2316_s24 = sld [smem:[#allocation4_spill]] }
 0x8d2   : > { %s2317_s25 = sld [smem:[#allocation5_spill]] }
 0x8d3   : > { %s2318_s26 = sld [smem:[#allocation7_spill]] }
 0x8d4   : > { %s2319_s27 = sld [smem:[#allocation8_spill]] }
 0x8d6   : > { %s27_s28 = sadd.s32 1, %s2315_s9  }
 0x8d7   : > { %p24_p9 = scmp.ge.s32.totalorder %s27_s28, 6  }
 0x8d9   :  { %26 = sbr.rel (!%p24_p9) target bundleno = 12 (0xc), region = 129 }

</bundles_post_ra>
